<compile_context>
chip_gen: v5e
topology: v5e:2x2
jax: 0.10.0
libtpu: 0.0.40
codegen_flags: <defaults>
</compile_context>

<pallas_src>
import jax
import jax.numpy as jnp
import numpy as np
from jax import lax
from jax.experimental import pallas as pl
from jax.experimental.pallas import tpu as pltpu

# ---------------- problem sizes (small, consistent with the module) ----------------
B = 2            # meta batch size
N_CTX = 64       # context points per task
N_QRY = 32       # query points per task
D_IN = 3         # SDF coordinate dim
HID = 32         # hidden width
D_OUT = 1        # SDF value
NUM_META_STEPS = 3
INIT_LR = 0.1

# packed parameter tile: columns [W1_c0, W1_c1, W1_c2, b1, w2, b2, pad, pad]
PACK_W = 8
_C_B1 = D_IN          # 3
_C_W2 = D_IN + 1      # 4
_C_B2 = D_IN + 2      # 5

# per-task point slab rows: [x0, x1, x2, ones, y, qx0, qx1, qx2]
CTX_ROWS = 2 * D_IN + 2                  # 8
_R_Y = D_IN + 1                           # 4
_R_QX = D_IN + 2                          # 5

# output slab: rows 0..HID-1 = packed fast params (lanes 0..PACK_W-1),
#              rows HID..    = query output (lanes 0..N_QRY-1), lane-dense 128 wide.
OUT_LANES = 128
OUT_ROWS = HID + 8                        # 40 (sublane-aligned)

assert D_OUT == 1, "kernel assumes a scalar SDF output"

_HIGH = lax.Precision.HIGHEST


def metasdf_kernel(ctx_ref, plr_ref, out_ref):
    f32 = jnp.float32

    # ---- per-task points, feature-major: point index on the lane axis (loop-invariant) ----
    x_aug = ctx_ref[0, 0:D_IN + 1, :]                 # (4, N_CTX): [x; ones]
    x = ctx_ref[0, 0:D_IN, :]                         # (3, N_CTX)
    y = ctx_ref[0, _R_Y:_R_Y + 1, :]                  # (1, N_CTX)
    qx = ctx_ref[0, _R_QX:_R_QX + D_IN, 0:N_QRY]      # (3, N_QRY)

    # ---- packed params (HID, PACK_W); per-step lrs live in the same input slab ----
    p = plr_ref[:, 0:PACK_W]                          # (HID, 8)

    gscale = 2.0 / float(N_CTX * D_OUT)

    # ---- inner-loop adaptation (static trip count -> unrolled) ----
    for j in range(NUM_META_STEPS):
        w1 = p[:, 0:D_IN]                             # (HID, 3)
        b1 = p[:, _C_B1:_C_B1 + 1]                    # (HID, 1)
        w2 = p[:, _C_W2:_C_W2 + 1]                    # (HID, 1)  (W2 row as a column)
        b2 = p[0:1, _C_B2:_C_B2 + 1]                  # (1, 1)

        # forward: MXU matmul + one sublane reduce
        h_pre = jnp.dot(w1, x, precision=_HIGH,
                        preferred_element_type=f32) + b1                    # (HID, N_CTX)
        h = jnp.maximum(h_pre, 0.0)
        pred = jnp.sum(h * w2, axis=0, keepdims=True) + b2                  # (1, N_CTX)

        # backward of MSE(pred, y) = mean((pred - y)^2)
        dpred = gscale * (pred - y)                                         # (1, N_CTX)
        dh_pre = jnp.where(h_pre > 0.0, w2 * dpred, 0.0)                    # (HID, N_CTX)
        # [dW1 | db1] = dh_pre @ [x; 1]^T  and  dw2 = h @ dpred^T, contracting the
        # point axis (contract-last-dims dot_general), K = N_CTX on the MXU.
        dw1b1 = lax.dot_general(dh_pre, x_aug, (((1,), (1,)), ((), ())),
                                precision=_HIGH, preferred_element_type=f32)  # (HID, 4)
        dw2 = lax.dot_general(h, dpred, (((1,), (1,)), ((), ())),
                              precision=_HIGH, preferred_element_type=f32)    # (HID, 1)
        db2 = jnp.sum(dpred, axis=1, keepdims=True)                           # (1, 1)

        # packed gradient tile, same column layout as p
        g = jnp.concatenate(
            [dw1b1, dw2, jnp.broadcast_to(db2, (HID, 1)),
             jnp.zeros((HID, PACK_W - (D_IN + 3)), f32)], axis=1)             # (HID, 8)

        # per-parameter, per-step learning rates: one wide tile load + one packed FMA
        lr_j = plr_ref[:, (j + 1) * PACK_W:(j + 2) * PACK_W]                  # (HID, 8)
        p = p - lr_j * g

    # ---- query forward with adapted (fast) params ----
    qh = jnp.maximum(
        jnp.dot(p[:, 0:D_IN], qx, precision=_HIGH, preferred_element_type=f32)
        + p[:, _C_B1:_C_B1 + 1], 0.0)                                         # (HID, N_QRY)
    qo = jnp.sum(qh * p[:, _C_W2:_C_W2 + 1], axis=0, keepdims=True) \
        + p[0:1, _C_B2:_C_B2 + 1]                                             # (1, N_QRY)

    # ---- single lane-dense output slab: full-width (128-lane) unmasked stores ----
    fp_block = jnp.concatenate(
        [p, jnp.zeros((HID, OUT_LANES - PACK_W), f32)], axis=1)               # (HID, 128)
    q_row = jnp.concatenate(
        [qo, jnp.zeros((1, OUT_LANES - N_QRY), f32)], axis=1)                 # (1, 128)
    out_ref[0, 0:HID, :] = fp_block.astype(out_ref.dtype)
    out_ref[0, HID:OUT_ROWS, :] = jnp.broadcast_to(
        q_row, (OUT_ROWS - HID, OUT_LANES)).astype(out_ref.dtype)


def _pack_cols(w1, b1, w2, b2):
    """Pack (W1, b1, W2, b2)-shaped tensors into one (HID, PACK_W) column tile."""
    return jnp.concatenate(
        [
            w1.reshape(HID, D_IN),
            b1.reshape(HID, 1),
            w2.reshape(HID, 1),                                    # W2 is (D_OUT=1, HID)
            jnp.broadcast_to(b2.reshape(1, 1), (HID, 1)),
            jnp.zeros((HID, PACK_W - (D_IN + 3)), jnp.float32),
        ],
        axis=1,
    )


@jax.jit
def metasdf_forward(context_x, context_y, query_x, params, lrs):
    """Pallas implementation of MetaSDF.forward -> (query_output, fast_params)."""
    w1, b1, w2, b2 = params
    lrw1, lrb1, lrw2, lrb2 = lrs

    # ---- input slab 1: per-task points, feature-major (B, CTX_ROWS, N_CTX) ----
    ctx = jnp.concatenate(
        [
            jnp.swapaxes(context_x, 1, 2),                          # (B, 3, 64)
            jnp.ones((B, 1, N_CTX), jnp.float32),                   # augmentation row (db1)
            jnp.swapaxes(context_y, 1, 2),                          # (B, 1, 64)
            jnp.pad(jnp.swapaxes(query_x, 1, 2),                    # (B, 3, 64)
                    ((0, 0), (0, 0), (0, N_CTX - N_QRY))),
        ],
        axis=1,
    )                                                               # (B, 8, 64)

    # ---- input slab 2: packed params + all per-step packed lrs, (HID, (1+S)*PACK_W) ----
    plr = jnp.concatenate(
        [_pack_cols(w1, b1, w2, b2)]
        + [_pack_cols(lrw1[j], lrb1[j], lrw2[j], lrb2[j]) for j in range(NUM_META_STEPS)],
        axis=1,
    )                                                               # (32, 32)

    grid_spec = pltpu.PrefetchScalarGridSpec(
        num_scalar_prefetch=0,
        grid=(B,),
        in_specs=[
            pl.BlockSpec((1, CTX_ROWS, N_CTX), lambda b: (b, 0, 0)),               # points
            pl.BlockSpec((HID, (1 + NUM_META_STEPS) * PACK_W), lambda b: (0, 0)),  # params+lrs
        ],
        out_specs=pl.BlockSpec((1, OUT_ROWS, OUT_LANES), lambda b: (b, 0, 0)),
    )

    slab = pl.pallas_call(
        metasdf_kernel,
        out_shape=jax.ShapeDtypeStruct((B, OUT_ROWS, OUT_LANES), jnp.float32),
        grid_spec=grid_spec,
        compiler_params=pltpu.CompilerParams(dimension_semantics=("parallel",)),
    )(ctx, plr)

    fp = slab[:, 0:HID, 0:PACK_W]                                   # (B, HID, 8)
    out = slab[:, HID, 0:N_QRY][:, :, None]                         # (B, N_QRY, D_OUT)
    fast_params = {
        "net.0.weight": fp[:, :, 0:D_IN],                           # (B, HID, D_IN)
        "net.0.bias": fp[:, :, _C_B1],                              # (B, HID)
        "net.1.weight": jnp.swapaxes(fp[:, :, _C_W2:_C_W2 + 1], 1, 2),  # (B, D_OUT, HID)
        "net.1.bias": fp[:, 0:1, _C_B2],                            # (B, D_OUT)
    }
    return out, fast_params


# --------------------------- pure-JAX reference (correctness) ---------------------------
def _hypo_apply(w1, b1, w2, b2, x):
    h = jnp.maximum(x @ w1.T + b1, 0.0)
    return h @ w2.T + b2


def _ref_forward(context_x, context_y, query_x, params, lrs):
    w1, b1, w2, b2 = params
    lrw1, lrb1, lrw2, lrb2 = lrs

    def per_task(cx, cy, qx):
        p = (w1, b1.reshape(1, HID), w2, b2.reshape(1, D_OUT))

        def loss_fn(p):
            pred = _hypo_apply(p[0], p[1], p[2], p[3], cx)
            return jnp.mean((pred - cy) ** 2)

        for j in range(NUM_META_STEPS):
            g = jax.grad(loss_fn)(p)
            p = (p[0] - lrw1[j] * g[0], p[1] - lrb1[j] * g[1],
                 p[2] - lrw2[j] * g[2], p[3] - lrb2[j] * g[3])
        return _hypo_apply(p[0], p[1], p[2], p[3], qx), p

    return jax.vmap(per_task)(context_x, context_y, query_x)


if __name__ == "__main__":
    key = jax.random.PRNGKey(0)
    k1, k2, k3, k4, k5, k6 = jax.random.split(key, 6)

    # deterministic hypo-module parameters (synthetic init)
    w1 = jax.random.normal(k1, (HID, D_IN), jnp.float32) * (1.0 / np.sqrt(D_IN))
    b1 = jax.random.normal(k2, (1, HID), jnp.float32) * 0.01
    w2 = jax.random.normal(k3, (D_OUT, HID), jnp.float32) * (1.0 / np.sqrt(HID))
    b2 = jax.random.normal(k4, (1, D_OUT), jnp.float32) * 0.01
    params = (w1, b1, w2, b2)

    # per-parameter, per-step learning rates (all init_lr, as in the module at init)
    lrs = (
        jnp.full((NUM_META_STEPS, HID, D_IN), INIT_LR, jnp.float32),
        jnp.full((NUM_META_STEPS, 1, HID), INIT_LR, jnp.float32),
        jnp.full((NUM_META_STEPS, D_OUT, HID), INIT_LR, jnp.float32),
        jnp.full((NUM_META_STEPS, 1, D_OUT), INIT_LR, jnp.float32),
    )

    # meta_batch = {'context': (context_x, context_y), 'query': (query_x,)}
    context_x = jax.random.normal(k5, (B, N_CTX, D_IN), jnp.float32)
    context_y = jnp.tanh(jnp.sum(context_x, axis=-1, keepdims=True))  # synthetic SDF targets
    query_x = jax.random.normal(k6, (B, N_QRY, D_IN), jnp.float32)

    out, fast_params = metasdf_forward(context_x, context_y, query_x, params, lrs)
    out = jax.block_until_ready(out)

    # validate against a pure-JAX (autodiff) reference of the same forward
    ref_out, ref_p = _ref_forward(context_x, context_y, query_x, params, lrs)
    np.testing.assert_allclose(np.asarray(out), np.asarray(ref_out), rtol=1e-3, atol=1e-3)
    np.testing.assert_allclose(np.asarray(fast_params["net.0.weight"]),
                               np.asarray(ref_p[0]), rtol=1e-3, atol=1e-3)
    np.testing.assert_allclose(np.asarray(fast_params["net.0.bias"]),
                               np.asarray(ref_p[1]).reshape(B, HID), rtol=1e-3, atol=1e-3)
    np.testing.assert_allclose(np.asarray(fast_params["net.1.weight"]),
                               np.asarray(ref_p[2]), rtol=1e-3, atol=1e-3)
    np.testing.assert_allclose(np.asarray(fast_params["net.1.bias"]),
                               np.asarray(ref_p[3]).reshape(B, D_OUT), rtol=1e-3, atol=1e-3)

    print("KERNEL_OK")
</pallas_src>

<mosaic_0001>
module attributes {stable_mosaic.version = 11 : i64} {
  func.func @metasdf_kernel(%arg0: i32, %arg1: memref<1x8x64xf32, #tpu.memory_space<vmem>>, %arg2: memref<32x32xf32, #tpu.memory_space<vmem>>, %arg3: memref<1x40x128xf32, #tpu.memory_space<vmem>>) attributes {dimension_semantics = [#tpu.dimension_semantics<parallel>], iteration_bounds = array<i64: 2>, scalar_prefetch = 0 : i64, scratch_operands = 0 : i64, tpu.core_type = #tpu.core_type<tc>, window_params = [{transform_indices = @transform_0, window_bounds = array<i64: 1, 8, 64>}, {pipeline_mode = #tpu.pipeline_mode<synchronous>, transform_indices = @transform_1, window_bounds = array<i64: 32, 32>}, {transform_indices = @transform_2, window_bounds = array<i64: 1, 40, 128>}]} {
    %c0 = arith.constant 0 : index
    %c0_0 = arith.constant 0 : index
    %c0_1 = arith.constant 0 : index
    %0 = vector.load %arg1[%c0, %c0_0, %c0_1] : memref<1x8x64xf32, #tpu.memory_space<vmem>>, vector<1x4x64xf32>
    %1 = vector.shape_cast %0 : vector<1x4x64xf32> to vector<4x64xf32>
    %c0_2 = arith.constant 0 : index
    %c0_3 = arith.constant 0 : index
    %c0_4 = arith.constant 0 : index
    %2 = vector.load %arg1[%c0_2, %c0_3, %c0_4] : memref<1x8x64xf32, #tpu.memory_space<vmem>>, vector<1x3x64xf32>
    %3 = vector.shape_cast %2 : vector<1x3x64xf32> to vector<3x64xf32>
    %c0_5 = arith.constant 0 : index
    %c4 = arith.constant 4 : index
    %c0_6 = arith.constant 0 : index
    %4 = vector.load %arg1[%c0_5, %c4, %c0_6] : memref<1x8x64xf32, #tpu.memory_space<vmem>>, vector<1x1x64xf32>
    %5 = vector.shape_cast %4 : vector<1x1x64xf32> to vector<1x64xf32>
    %c0_7 = arith.constant 0 : index
    %c5 = arith.constant 5 : index
    %c0_8 = arith.constant 0 : index
    %6 = vector.load %arg1[%c0_7, %c5, %c0_8] : memref<1x8x64xf32, #tpu.memory_space<vmem>>, vector<1x3x32xf32>
    %7 = vector.shape_cast %6 : vector<1x3x32xf32> to vector<3x32xf32>
    %c0_9 = arith.constant 0 : index
    %c0_10 = arith.constant 0 : index
    %8 = vector.load %arg2[%c0_9, %c0_10] : memref<32x32xf32, #tpu.memory_space<vmem>>, vector<32x8xf32>
    %9 = vector.extract_strided_slice %8 {offsets = [0, 0], sizes = [32, 3], strides = [1, 1]} : vector<32x8xf32> to vector<32x3xf32>
    %10 = vector.extract_strided_slice %8 {offsets = [0, 3], sizes = [32, 1], strides = [1, 1]} : vector<32x8xf32> to vector<32x1xf32>
    %11 = vector.extract_strided_slice %8 {offsets = [0, 4], sizes = [32, 1], strides = [1, 1]} : vector<32x8xf32> to vector<32x1xf32>
    %12 = vector.extract_strided_slice %8 {offsets = [0, 5], sizes = [1, 1], strides = [1, 1]} : vector<32x8xf32> to vector<1x1xf32>
    %cst = arith.constant dense<0.000000e+00> : vector<32x64xf32>
    %13 = tpu.matmul %9, %3, %cst {dimension_numbers = #tpu.dot_dimension_numbers<[1], [0], [0], [1], [0, 0, 1, 1], [], []>, precision = #tpu.contract_precision<fp32>} : vector<32x3xf32>, vector<3x64xf32>, vector<32x64xf32> -> vector<32x64xf32>
    %14 = vector.broadcast %10 : vector<32x1xf32> to vector<32x64xf32>
    %15 = arith.addf %13, %14 : vector<32x64xf32>
    %cst_11 = arith.constant 0.000000e+00 : f32
    %16 = vector.broadcast %cst_11 : f32 to vector<32x64xf32>
    %17 = arith.maximumf %15, %16 : vector<32x64xf32>
    %18 = vector.broadcast %11 : vector<32x1xf32> to vector<32x64xf32>
    %19 = arith.mulf %17, %18 : vector<32x64xf32>
    %cst_12 = arith.constant dense<0.000000e+00> : vector<64xf32>
    %20 = vector.multi_reduction <add>, %19, %cst_12 [0] : vector<32x64xf32> to vector<64xf32>
    %21 = vector.shape_cast %20 : vector<64xf32> to vector<1x64xf32>
    %22 = vector.broadcast %12 : vector<1x1xf32> to vector<1x64xf32>
    %23 = arith.addf %21, %22 : vector<1x64xf32>
    %24 = arith.subf %23, %5 : vector<1x64xf32>
    %cst_13 = arith.constant 3.125000e-02 : f32
    %25 = vector.broadcast %cst_13 : f32 to vector<1x64xf32>
    %26 = arith.mulf %25, %24 : vector<1x64xf32>
    %cst_14 = arith.constant 0.000000e+00 : f32
    %27 = vector.broadcast %cst_14 : f32 to vector<32x64xf32>
    %28 = arith.cmpf ogt, %15, %27 : vector<32x64xf32>
    %29 = vector.broadcast %11 : vector<32x1xf32> to vector<32x64xf32>
    %30 = vector.broadcast %26 : vector<1x64xf32> to vector<32x64xf32>
    %31 = arith.mulf %29, %30 : vector<32x64xf32>
    %cst_15 = arith.constant 0.000000e+00 : f32
    %32 = vector.broadcast %cst_15 : f32 to vector<32x64xf32>
    %33 = arith.select %28, %31, %32 : vector<32x64xi1>, vector<32x64xf32>
    %cst_16 = arith.constant dense<0.000000e+00> : vector<32x4xf32>
    %34 = tpu.matmul %33, %1, %cst_16 {dimension_numbers = #tpu.dot_dimension_numbers<[1], [1], [0], [0], [0, 0, 1, 0], [], []>, precision = #tpu.contract_precision<fp32>} : vector<32x64xf32>, vector<4x64xf32>, vector<32x4xf32> -> vector<32x4xf32>
    %cst_17 = arith.constant dense<0.000000e+00> : vector<32x1xf32>
    %35 = tpu.matmul %17, %26, %cst_17 {dimension_numbers = #tpu.dot_dimension_numbers<[1], [1], [0], [0], [0, 0, 1, 0], [], []>, precision = #tpu.contract_precision<fp32>} : vector<32x64xf32>, vector<1x64xf32>, vector<32x1xf32> -> vector<32x1xf32>
    %cst_18 = arith.constant dense<0.000000e+00> : vector<1xf32>
    %36 = vector.multi_reduction <add>, %26, %cst_18 [1] : vector<1x64xf32> to vector<1xf32>
    %37 = vector.shape_cast %36 : vector<1xf32> to vector<1x1xf32>
    %38 = vector.shape_cast %37 : vector<1x1xf32> to vector<1x1xf32>
    %39 = vector.broadcast %38 : vector<1x1xf32> to vector<32x1xf32>
    %cst_19 = arith.constant 0.000000e+00 : f32
    %40 = vector.broadcast %cst_19 : f32 to vector<32x2xf32>
    %41 = tpu.concatenate %34, %35, %39, %40 in 1 : vector<32x4xf32>, vector<32x1xf32>, vector<32x1xf32>, vector<32x2xf32> -> vector<32x8xf32>
    %c0_20 = arith.constant 0 : index
    %c8 = arith.constant 8 : index
    %42 = vector.load %arg2[%c0_20, %c8] : memref<32x32xf32, #tpu.memory_space<vmem>>, vector<32x8xf32>
    %43 = arith.mulf %42, %41 : vector<32x8xf32>
    %44 = arith.subf %8, %43 : vector<32x8xf32>
    %45 = vector.extract_strided_slice %44 {offsets = [0, 0], sizes = [32, 3], strides = [1, 1]} : vector<32x8xf32> to vector<32x3xf32>
    %46 = vector.extract_strided_slice %44 {offsets = [0, 3], sizes = [32, 1], strides = [1, 1]} : vector<32x8xf32> to vector<32x1xf32>
    %47 = vector.extract_strided_slice %44 {offsets = [0, 4], sizes = [32, 1], strides = [1, 1]} : vector<32x8xf32> to vector<32x1xf32>
    %48 = vector.extract_strided_slice %44 {offsets = [0, 5], sizes = [1, 1], strides = [1, 1]} : vector<32x8xf32> to vector<1x1xf32>
    %cst_21 = arith.constant dense<0.000000e+00> : vector<32x64xf32>
    %49 = tpu.matmul %45, %3, %cst_21 {dimension_numbers = #tpu.dot_dimension_numbers<[1], [0], [0], [1], [0, 0, 1, 1], [], []>, precision = #tpu.contract_precision<fp32>} : vector<32x3xf32>, vector<3x64xf32>, vector<32x64xf32> -> vector<32x64xf32>
    %50 = vector.broadcast %46 : vector<32x1xf32> to vector<32x64xf32>
    %51 = arith.addf %49, %50 : vector<32x64xf32>
    %cst_22 = arith.constant 0.000000e+00 : f32
    %52 = vector.broadcast %cst_22 : f32 to vector<32x64xf32>
    %53 = arith.maximumf %51, %52 : vector<32x64xf32>
    %54 = vector.broadcast %47 : vector<32x1xf32> to vector<32x64xf32>
    %55 = arith.mulf %53, %54 : vector<32x64xf32>
    %cst_23 = arith.constant dense<0.000000e+00> : vector<64xf32>
    %56 = vector.multi_reduction <add>, %55, %cst_23 [0] : vector<32x64xf32> to vector<64xf32>
    %57 = vector.shape_cast %56 : vector<64xf32> to vector<1x64xf32>
    %58 = vector.broadcast %48 : vector<1x1xf32> to vector<1x64xf32>
    %59 = arith.addf %57, %58 : vector<1x64xf32>
    %60 = arith.subf %59, %5 : vector<1x64xf32>
    %cst_24 = arith.constant 3.125000e-02 : f32
    %61 = vector.broadcast %cst_24 : f32 to vector<1x64xf32>
    %62 = arith.mulf %61, %60 : vector<1x64xf32>
    %cst_25 = arith.constant 0.000000e+00 : f32
    %63 = vector.broadcast %cst_25 : f32 to vector<32x64xf32>
    %64 = arith.cmpf ogt, %51, %63 : vector<32x64xf32>
    %65 = vector.broadcast %47 : vector<32x1xf32> to vector<32x64xf32>
    %66 = vector.broadcast %62 : vector<1x64xf32> to vector<32x64xf32>
    %67 = arith.mulf %65, %66 : vector<32x64xf32>
    %cst_26 = arith.constant 0.000000e+00 : f32
    %68 = vector.broadcast %cst_26 : f32 to vector<32x64xf32>
    %69 = arith.select %64, %67, %68 : vector<32x64xi1>, vector<32x64xf32>
    %cst_27 = arith.constant dense<0.000000e+00> : vector<32x4xf32>
    %70 = tpu.matmul %69, %1, %cst_27 {dimension_numbers = #tpu.dot_dimension_numbers<[1], [1], [0], [0], [0, 0, 1, 0], [], []>, precision = #tpu.contract_precision<fp32>} : vector<32x64xf32>, vector<4x64xf32>, vector<32x4xf32> -> vector<32x4xf32>
    %cst_28 = arith.constant dense<0.000000e+00> : vector<32x1xf32>
    %71 = tpu.matmul %53, %62, %cst_28 {dimension_numbers = #tpu.dot_dimension_numbers<[1], [1], [0], [0], [0, 0, 1, 0], [], []>, precision = #tpu.contract_precision<fp32>} : vector<32x64xf32>, vector<1x64xf32>, vector<32x1xf32> -> vector<32x1xf32>
    %cst_29 = arith.constant dense<0.000000e+00> : vector<1xf32>
    %72 = vector.multi_reduction <add>, %62, %cst_29 [1] : vector<1x64xf32> to vector<1xf32>
    %73 = vector.shape_cast %72 : vector<1xf32> to vector<1x1xf32>
    %74 = vector.shape_cast %73 : vector<1x1xf32> to vector<1x1xf32>
    %75 = vector.broadcast %74 : vector<1x1xf32> to vector<32x1xf32>
    %cst_30 = arith.constant 0.000000e+00 : f32
    %76 = vector.broadcast %cst_30 : f32 to vector<32x2xf32>
    %77 = tpu.concatenate %70, %71, %75, %76 in 1 : vector<32x4xf32>, vector<32x1xf32>, vector<32x1xf32>, vector<32x2xf32> -> vector<32x8xf32>
    %c0_31 = arith.constant 0 : index
    %c16 = arith.constant 16 : index
    %78 = vector.load %arg2[%c0_31, %c16] : memref<32x32xf32, #tpu.memory_space<vmem>>, vector<32x8xf32>
    %79 = arith.mulf %78, %77 : vector<32x8xf32>
    %80 = arith.subf %44, %79 : vector<32x8xf32>
    %81 = vector.extract_strided_slice %80 {offsets = [0, 0], sizes = [32, 3], strides = [1, 1]} : vector<32x8xf32> to vector<32x3xf32>
    %82 = vector.extract_strided_slice %80 {offsets = [0, 3], sizes = [32, 1], strides = [1, 1]} : vector<32x8xf32> to vector<32x1xf32>
    %83 = vector.extract_strided_slice %80 {offsets = [0, 4], sizes = [32, 1], strides = [1, 1]} : vector<32x8xf32> to vector<32x1xf32>
    %84 = vector.extract_strided_slice %80 {offsets = [0, 5], sizes = [1, 1], strides = [1, 1]} : vector<32x8xf32> to vector<1x1xf32>
    %cst_32 = arith.constant dense<0.000000e+00> : vector<32x64xf32>
    %85 = tpu.matmul %81, %3, %cst_32 {dimension_numbers = #tpu.dot_dimension_numbers<[1], [0], [0], [1], [0, 0, 1, 1], [], []>, precision = #tpu.contract_precision<fp32>} : vector<32x3xf32>, vector<3x64xf32>, vector<32x64xf32> -> vector<32x64xf32>
    %86 = vector.broadcast %82 : vector<32x1xf32> to vector<32x64xf32>
    %87 = arith.addf %85, %86 : vector<32x64xf32>
    %cst_33 = arith.constant 0.000000e+00 : f32
    %88 = vector.broadcast %cst_33 : f32 to vector<32x64xf32>
    %89 = arith.maximumf %87, %88 : vector<32x64xf32>
    %90 = vector.broadcast %83 : vector<32x1xf32> to vector<32x64xf32>
    %91 = arith.mulf %89, %90 : vector<32x64xf32>
    %cst_34 = arith.constant dense<0.000000e+00> : vector<64xf32>
    %92 = vector.multi_reduction <add>, %91, %cst_34 [0] : vector<32x64xf32> to vector<64xf32>
    %93 = vector.shape_cast %92 : vector<64xf32> to vector<1x64xf32>
    %94 = vector.broadcast %84 : vector<1x1xf32> to vector<1x64xf32>
    %95 = arith.addf %93, %94 : vector<1x64xf32>
    %96 = arith.subf %95, %5 : vector<1x64xf32>
    %cst_35 = arith.constant 3.125000e-02 : f32
    %97 = vector.broadcast %cst_35 : f32 to vector<1x64xf32>
    %98 = arith.mulf %97, %96 : vector<1x64xf32>
    %cst_36 = arith.constant 0.000000e+00 : f32
    %99 = vector.broadcast %cst_36 : f32 to vector<32x64xf32>
    %100 = arith.cmpf ogt, %87, %99 : vector<32x64xf32>
    %101 = vector.broadcast %83 : vector<32x1xf32> to vector<32x64xf32>
    %102 = vector.broadcast %98 : vector<1x64xf32> to vector<32x64xf32>
    %103 = arith.mulf %101, %102 : vector<32x64xf32>
    %cst_37 = arith.constant 0.000000e+00 : f32
    %104 = vector.broadcast %cst_37 : f32 to vector<32x64xf32>
    %105 = arith.select %100, %103, %104 : vector<32x64xi1>, vector<32x64xf32>
    %cst_38 = arith.constant dense<0.000000e+00> : vector<32x4xf32>
    %106 = tpu.matmul %105, %1, %cst_38 {dimension_numbers = #tpu.dot_dimension_numbers<[1], [1], [0], [0], [0, 0, 1, 0], [], []>, precision = #tpu.contract_precision<fp32>} : vector<32x64xf32>, vector<4x64xf32>, vector<32x4xf32> -> vector<32x4xf32>
    %cst_39 = arith.constant dense<0.000000e+00> : vector<32x1xf32>
    %107 = tpu.matmul %89, %98, %cst_39 {dimension_numbers = #tpu.dot_dimension_numbers<[1], [1], [0], [0], [0, 0, 1, 0], [], []>, precision = #tpu.contract_precision<fp32>} : vector<32x64xf32>, vector<1x64xf32>, vector<32x1xf32> -> vector<32x1xf32>
    %cst_40 = arith.constant dense<0.000000e+00> : vector<1xf32>
    %108 = vector.multi_reduction <add>, %98, %cst_40 [1] : vector<1x64xf32> to vector<1xf32>
    %109 = vector.shape_cast %108 : vector<1xf32> to vector<1x1xf32>
    %110 = vector.shape_cast %109 : vector<1x1xf32> to vector<1x1xf32>
    %111 = vector.broadcast %110 : vector<1x1xf32> to vector<32x1xf32>
    %cst_41 = arith.constant 0.000000e+00 : f32
    %112 = vector.broadcast %cst_41 : f32 to vector<32x2xf32>
    %113 = tpu.concatenate %106, %107, %111, %112 in 1 : vector<32x4xf32>, vector<32x1xf32>, vector<32x1xf32>, vector<32x2xf32> -> vector<32x8xf32>
    %c0_42 = arith.constant 0 : index
    %c24 = arith.constant 24 : index
    %114 = vector.load %arg2[%c0_42, %c24] : memref<32x32xf32, #tpu.memory_space<vmem>>, vector<32x8xf32>
    %115 = arith.mulf %114, %113 : vector<32x8xf32>
    %116 = arith.subf %80, %115 : vector<32x8xf32>
    %117 = vector.extract_strided_slice %116 {offsets = [0, 0], sizes = [32, 3], strides = [1, 1]} : vector<32x8xf32> to vector<32x3xf32>
    %cst_43 = arith.constant dense<0.000000e+00> : vector<32x32xf32>
    %118 = tpu.matmul %117, %7, %cst_43 {dimension_numbers = #tpu.dot_dimension_numbers<[1], [0], [0], [1], [0, 0, 1, 1], [], []>, precision = #tpu.contract_precision<fp32>} : vector<32x3xf32>, vector<3x32xf32>, vector<32x32xf32> -> vector<32x32xf32>
    %119 = vector.extract_strided_slice %116 {offsets = [0, 3], sizes = [32, 1], strides = [1, 1]} : vector<32x8xf32> to vector<32x1xf32>
    %120 = vector.broadcast %119 : vector<32x1xf32> to vector<32x32xf32>
    %121 = arith.addf %118, %120 : vector<32x32xf32>
    %cst_44 = arith.constant 0.000000e+00 : f32
    %122 = vector.broadcast %cst_44 : f32 to vector<32x32xf32>
    %123 = arith.maximumf %121, %122 : vector<32x32xf32>
    %124 = vector.extract_strided_slice %116 {offsets = [0, 4], sizes = [32, 1], strides = [1, 1]} : vector<32x8xf32> to vector<32x1xf32>
    %125 = vector.broadcast %124 : vector<32x1xf32> to vector<32x32xf32>
    %126 = arith.mulf %123, %125 : vector<32x32xf32>
    %cst_45 = arith.constant dense<0.000000e+00> : vector<32xf32>
    %127 = vector.multi_reduction <add>, %126, %cst_45 [0] : vector<32x32xf32> to vector<32xf32>
    %128 = vector.shape_cast %127 : vector<32xf32> to vector<1x32xf32>
    %129 = vector.extract_strided_slice %116 {offsets = [0, 5], sizes = [1, 1], strides = [1, 1]} : vector<32x8xf32> to vector<1x1xf32>
    %130 = vector.broadcast %129 : vector<1x1xf32> to vector<1x32xf32>
    %131 = arith.addf %128, %130 : vector<1x32xf32>
    %cst_46 = arith.constant 0.000000e+00 : f32
    %132 = vector.broadcast %cst_46 : f32 to vector<32x120xf32>
    %133 = tpu.concatenate %116, %132 in 1 : vector<32x8xf32>, vector<32x120xf32> -> vector<32x128xf32>
    %cst_47 = arith.constant 0.000000e+00 : f32
    %134 = vector.broadcast %cst_47 : f32 to vector<1x96xf32>
    %135 = tpu.concatenate %131, %134 in 1 : vector<1x32xf32>, vector<1x96xf32> -> vector<1x128xf32>
    %c0_48 = arith.constant 0 : index
    %c0_49 = arith.constant 0 : index
    %c0_50 = arith.constant 0 : index
    %136 = vector.load %arg3[%c0_48, %c0_49, %c0_50] : memref<1x40x128xf32, #tpu.memory_space<vmem>>, vector<1x32x128xf32>
    %137 = vector.shape_cast %136 : vector<1x32x128xf32> to vector<32x128xf32>
    %138 = vector.shape_cast %133 : vector<32x128xf32> to vector<1x32x128xf32>
    tpu.vector_store %arg3[%c0_48, %c0_49, %c0_50], %138 {strides = array<i32>} : memref<1x40x128xf32, #tpu.memory_space<vmem>>, vector<1x32x128xf32>,
    %139 = vector.shape_cast %135 : vector<1x128xf32> to vector<1x128xf32>
    %140 = vector.broadcast %139 : vector<1x128xf32> to vector<8x128xf32>
    %c0_51 = arith.constant 0 : index
    %c32 = arith.constant 32 : index
    %c0_52 = arith.constant 0 : index
    %141 = vector.load %arg3[%c0_51, %c32, %c0_52] : memref<1x40x128xf32, #tpu.memory_space<vmem>>, vector<1x8x128xf32>
    %142 = vector.shape_cast %141 : vector<1x8x128xf32> to vector<8x128xf32>
    %143 = vector.shape_cast %140 : vector<8x128xf32> to vector<1x8x128xf32>
    tpu.vector_store %arg3[%c0_51, %c32, %c0_52], %143 {strides = array<i32>} : memref<1x40x128xf32, #tpu.memory_space<vmem>>, vector<1x8x128xf32>,
    return
  }
  func.func @transform_0(%arg0: i32) -> (i32, i32, i32) {
    %c0_i32 = arith.constant 0 : i32
    %c0_i32_0 = arith.constant 0 : i32
    %c0_i32_1 = arith.constant 0 : i32
    return %arg0, %c0_i32, %c0_i32_0 : i32, i32, i32
  }
  func.func @transform_1(%arg0: i32) -> (i32, i32) {
    %c0_i32 = arith.constant 0 : i32
    %c0_i32_0 = arith.constant 0 : i32
    %c0_i32_1 = arith.constant 0 : i32
    return %c0_i32, %c0_i32_0 : i32, i32
  }
  func.func @transform_2(%arg0: i32) -> (i32, i32, i32) {
    %c0_i32 = arith.constant 0 : i32
    %c0_i32_0 = arith.constant 0 : i32
    %c0_i32_1 = arith.constant 0 : i32
    return %arg0, %c0_i32, %c0_i32_0 : i32, i32, i32
  }
}

</mosaic_0001>

<bundles_post_ra>
// kernel: metasdf_forward.1
= control target key start
LH: loop header
LB: loop body
LE: loop exit
PB: predicated region body
PF: predicated region fallthrough
CT: control target
= control target key end

     0   :  { %s2577_s9 = smov 0   ;;  %s3002_s0 = inlined_call_operand.vmem [shape: f32[2,8,64], index: 0, kind: input, shape index: {}]   ;;  %s3003_s1 = inlined_call_operand.vmem [shape: f32[32,32], index: 1, kind: input, shape index: {}]   ;;  %s3004_s2 = inlined_call_operand.vmem [shape: f32[2,40,128], index: 2, kind: output, shape index: {}]  }
   0x1 LB: > { %s2483_s10 = sadd.s32 4294967295, %s2551_s9   ;;  %p2487_p0 = scmp.ge.s32.totalorder %s2551_s9, 1  ;;  %s2551_s9 = sphi %s2577_s9, %s12_s9  }
   0x2   : > { %p111_p1 = scmp.lt.s32.totalorder %s2551_s9, 3 }
   0x4   : > { %p112_p2 = pnand %p2487_p0, %p111_p1 }
   0x5   : > { %p132_p3 = scmp.lt.s32.totalorder (!%p112_p2), %s2483_s10, 1  ;;  %s2556_s23 = smov (!%p112_p2), 8  }
   0x6   : > { %115 = sbr.rel (%p112_p2) target bundleno = 2159 (0x86f), region = 28  ;;  %s2557_s24 = smov (!%p112_p2), 120  }
   0x7   : > { %s2558_s25 = smov (!%p112_p2), 16   ;;  %s2559_s28 = smov (!%p112_p2), 112  }
   0x8   : > { %s2560_s7 = smov (!%p112_p2), 24   ;;  %s2561_s8 = smov (!%p112_p2), 104  }
   0xb   : > { %v2588_v0 = vld [vmem:[%s3003_s1 + $0x10] sm:$0xff]  ;;  %vm169_vm0 = vcmask 23552   ;;  %v2593_v1 = vld [vmem:[%s3003_s1 + $0x18] sm:$0xff]  ;;  %v2598_v2 = vld [vmem:[%s3003_s1] sm:$0xff]  ;;  %s3006_s10 = smov (!%p132_p3, %s2483_s10), 1  ;;  %v2553_v10 = vmov 3  }
   0xc   : > { %v174_v3 = vsel %vm169_vm0, %v2588_v0, 0  ;;  %v176_v4 = vsel %vm169_vm0, %v2593_v1, 0  ;;  %v170_v5 = vsel %vm169_vm0, %v2598_v2, 0  ;;  %v2609_v6 = vld [vmem:[%s3003_s1 + $0x8] sm:$0xff]  ;;  %2513 = vset.pattern.permute.xlu1 %v2553_v10  ;;  %2512 = vset.pattern.permute.xlu0 %v2553_v10  ;;  %s2488_s19 = sshll.u32 %s3006_s10, 3  ;;  %vm178_vm1 = vcmask 1042432  }
   0xd   : > { %v2613_v7 = vand.u32 4294901760, %v174_v3  ;;  %v2615_v8 = vand.u32 4294901760, %v176_v4  ;;  %v199_v9 = vand.u32 4294901760, %v170_v5  ;;  %v172_v11 = vsel %vm169_vm0, %v2609_v6, 0  ;;  %161 = vperm.xlu1 %2513, %v2588_v0   ;;  %151 = vperm.xlu0 %2512, %v2598_v2   ;;  %s2633_s22 = scalar_lea.vmem %s3002_s0, %s2488_s19  ;;  %s2494_s11 = smul.u32 40, %s3006_s10 }
   0xe   : > { %v207_v12 = vand.u32 4294901760, %v172_v11  ;;  %v142_v17 = vld [vmem:[%s2633_s22] sm:$0x7]  ;;  %v2554_v36 = vmov 4   ;;  %v2555_v37 = vmov 5   ;;  %vm445_vm2 = vcmask 523264  }
   0xf   : > { %v2625_v13 = vsub.f32 %v174_v3, %v2613_v7  ;;  %v2628_v14 = vsub.f32 %v176_v4, %v2615_v8  ;;  %v200_v15 = vsub.f32 %v170_v5, %v199_v9  ;;  %v180_v20 = vsel %vm178_vm1, %v142_v17, 0  ;;  %2514 = vset.pattern.permute.xlu2 %v2554_v36  ;;  %v141_v59 = vld [vmem:[%s2633_s22] sm:$0xf]  ;;  %s2970_s14 = scalar_lea.vmem %s3004_s2, %s2494_s11 }
  0x10   : > { %v208_v16 = vsub.f32 %v172_v11, %v207_v12  ;;  %v2638_v21 = vand.u32 4294901760, %v180_v20  ;;  %426 = vperm.xlu2 %2514, %v2598_v2   ;;  %v492_v62 = vsel %vm445_vm2, %v141_v59, 0  ;;  %vm749_vm3 = vcmask 516096  }
  0x11   : > { %v217_v18 = vand.u32 4294901760, %v2625_v13  ;;  %v201_v19 = vand.u32 4294901760, %v200_v15  ;;  %v225_v23 = vand.u32 4294901760, %v2628_v14  ;;  %v2685_v3 = vand.u32 4294901760, %v492_v62 }
  0x12   : > { %v209_v25 = vand.u32 4294901760, %v208_v16  ;;  %2492 = vmatpush.msra.mxu2 %v2638_v21  ;;  %v2644_v27 = vsub.f32 %v180_v20, %v2638_v21  ;;  %198 = vmatpush.msra.mxu0 %v2638_v21  ;;  %vm754_vm8 = vcmask 31744   ;;  %vm759_vm9 = vcmask 39936  }
  0x13   : > { %v218_v22 = vsub.f32 %v2625_v13, %v217_v18  ;;  %v202_v24 = vsub.f32 %v200_v15, %v201_v19  ;;  %v226_v30 = vsub.f32 %v2628_v14, %v225_v23  ;;  %vm764_vm10 = vcmask 48128  }
  0x14   : > { %v2650_v29 = vand.u32 4294901760, %v2644_v27  ;;  %287 = vmatpush.msrb.mxu2 %v2644_v27  ;;  %v210_v31 = vsub.f32 %v208_v16, %v209_v25 }
  0x15   : > { %v219_v26 = vand.u32 4294901760, %v218_v22  ;;  %v203_v28 = vand.u32 4294901760, %v202_v24  ;;  %166 = vperm.xlu1 %2513, %v2593_v1   ;;  %156 = vperm.xlu0 %2512, %v2609_v6   ;;  %v227_v34 = vand.u32 4294901760, %v226_v30 }
  0x16   : > { %v250_v32 = vsub.f32 %v2644_v27, %v2650_v29  ;;  %369 = vmatpush.msrb.mxu0 %v2650_v29  ;;  %v211_v35 = vand.u32 4294901760, %v210_v31 }
  0x17   : > { %220 = vmatmul.f32.vlgmr.msra.gmra.mxu2 %v219_v26  ;;  %204 = vmatmul.f32.vlgmr.msra.gmra.mxu0 %v203_v28 }
  0x18   : > { %v2657_v33 = vand.u32 4294901760, %v250_v32  ;;  %430 = vperm.xlu2 %2514, %v2609_v6   ;;  %510 = vmatpush.xpose.msra.mxu2 %v2685_v3 }
  0x1a   : > { %2493 = vmatpush.msra.mxu3 %v2657_v33  ;;  %252 = vmatpush.msra.mxu1 %v2657_v33 }
  0x1b   : > { %262 = vmatmul.f32.vlgmr.msra.gmra.mxu3 %v2613_v7  ;;  %254 = vmatmul.f32.vlgmr.msra.gmra.mxu1 %v199_v9 }
  0x1c   : > { %325 = vmatpush.msrb.mxu3 %v2638_v21  ;;  %403 = vmatpush.msrb.mxu1 %v2638_v21 }
  0x1d   : > { %2515 = vset.pattern.permute.xlu0 %v2554_v36  ;;  %2516 = vset.pattern.permute.xlu1 %v2554_v36 }
  0x1e   : > { %434 = vperm.xlu0 %2515, %v2588_v0   ;;  %438 = vperm.xlu1 %2516, %v2593_v1  }
  0x1f   : > { %228 = vmatmul.f32.gmra.mxu2 %v227_v34  ;;  %212 = vmatmul.f32.gmra.mxu0 %v211_v35 }
  0x20   : > { %2517 = vset.pattern.permute.xlu2 %v2555_v37  ;;  %637 = vmatpush.xpose.msra.mxu1 %v2685_v3 }
  0x21   : > { %460 = vperm.xlu2 %2517, %v2598_v2  }
  0x23   : > { %266 = vmatmul.f32.gmra.mxu3 %v2615_v8  ;;  %258 = vmatmul.f32.gmra.mxu1 %v207_v12 }
  0x26   : > { %2519 = vset.pattern.permute.xlu0 %v2553_v10  ;;  %2518 = vset.pattern.permute.xlu1 %v2553_v10 }
  0x27   : > { %290 = vmatmul.f32.vlgmr.msrb.gmra.mxu2 %v200_v15  ;;  %371 = vmatmul.f32.vlgmr.msrb.gmra.mxu0 %v199_v9 }
  0x29   : > { %2520 = vset.pattern.permute.xlu2 %v2553_v10 }
  0x2b   : > { %329 = vmatmul.f32.vlgmr.msrb.gmra.mxu3 %v201_v19  ;;  %405 = vmatmul.f32.vlgmr.msrb.gmra.mxu1 %v199_v9  ;;  %v2689_v9 = vsub.f32 %v492_v62, %v2685_v3 }
  0x2c   : > { %907 = vmatpush.msrb.mxu1 %v2657_v33 }
  0x2d   : > { %599 = vmatpush.xpose.msra.mxu0 %v2689_v9 }
  0x2f   : > { %295 = vmatmul.f32.gmra.mxu2 %v208_v16  ;;  %375 = vmatmul.f32.gmra.mxu0 %v207_v12 }
  0x31   : > { %853 = vmatpush.msrb.mxu0 %v2638_v21 }
  0x33   : > { %335 = vmatmul.f32.gmra.mxu3 %v209_v25  ;;  %409 = vmatmul.f32.gmra.mxu1 %v207_v12 }
  0x37   : > { %300 = vmatmul.f32.gmra.mxu2 %v2625_v13  ;;  %379 = vmatmul.f32.gmra.mxu0 %v2613_v7  ;;  %v2696_v13 = vand.u32 4294901760, %v2689_v9 }
  0x39   : > { %681 = vmatpush.xpose.msrb.mxu2 %v2696_v13 }
  0x3b   : > { %341 = vmatmul.f32.gmra.mxu3 %v217_v18  ;;  %413 = vmatmul.f32.gmra.mxu1 %v2613_v7  ;;  %v562_v18 = vsub.f32 %v2689_v9, %v2696_v13 }
  0x3d   : > { %v2703_v24 = vand.u32 4294901760, %v562_v18 }
  0x3f   : > { %305 = vmatmul.f32.gmra.mxu2 %v2628_v14  ;;  %383 = vmatmul.f32.gmra.mxu0 %v2615_v8 }
  0x40   : > { %564 = vmatpush.xpose.msra.mxu3 %v2703_v24 }
  0x43   : > { %347 = vmatmul.f32.gmra.mxu3 %v225_v23  ;;  %417 = vmatmul.f32.gmra.mxu1 %v2615_v8 }
  0x44   : > { %715 = vmatpush.xpose.msrb.mxu3 %v2685_v3 }
  0x6a   : > { %v2693_v12 = vpop.permute.xlu2 %426 }
  0x7f   : > { %v152_v45 = vpop.permute.xlu0 %151  ;;  %v162_v55 = vpop.permute.xlu1 %161 }
  0x87   : > { %v157_v50 = vpop.permute.xlu0 %156  ;;  %v167_v16 = vpop.permute.xlu1 %166 }
  0x94   : > { %v205_v38 = vpop.f32.mrf.mxu0 }
  0x95   : > { %v206_v54 = vadd.f32 %v205_v38, %v152_v45 }
  0x98   : > { %v255_v40 = vpop.f32.mrf.mxu1 }
  0x99   : > { %v256_v60 = vadd.f32 %v255_v40, %v206_v54  ;;  %v439_v54 = vpop.permute.xlu1 %438 }
  0x9a   : > { %v221_v39 = vpop.f32.mrf.mxu2 }
  0x9b   : > { %v222_v4 = vadd.f32 %v221_v39, %v162_v55  ;;  %v431_v39 = vpop.permute.xlu2 %430 }
  0x9c   : > { %v213_v42 = vpop.f32.mrf.mxu0 }
  0x9d   : > { %v214_v52 = vadd.f32 %v213_v42, %v157_v50  ;;  %v435_v42 = vpop.permute.xlu0 %434 }
  0x9e   : > { %v263_v41 = vpop.f32.mrf.mxu3 }
  0x9f   : > { %v264_v14 = vadd.f32 %v263_v41, %v222_v4 }
  0xa0   : > { %v259_v44 = vpop.f32.mrf.mxu1 }
  0xa1   : > { %v260_v57 = vadd.f32 %v259_v44, %v214_v52 }
  0xa2   : > { %v229_v43 = vpop.f32.mrf.mxu2 }
  0xa3   : > { %v230_v25 = vadd.f32 %v229_v43, %v167_v16 }
  0xa4   : > { %v372_v48 = vpop.f32.mrf.mxu0 }
  0xa6   : > { %v267_v46 = vpop.f32.mrf.mxu3 }
  0xa7   : > { %v268_v34 = vadd.f32 %v267_v46, %v230_v25 }
  0xa8   : > { %v406_v49 = vpop.f32.mrf.mxu1 }
  0xaa   : > { %v291_v47 = vpop.f32.mrf.mxu2 }
  0xab   : > { %v292_v5 = vadd.f32 %v291_v47, %v256_v60 }
  0xac   : > { %v376_v56 = vpop.f32.mrf.mxu0 }
  0xae   : > { %v330_v51 = vpop.f32.mrf.mxu3 }
  0xaf   : > { %v331_v11 = vadd.f32 %v330_v51, %v292_v5 }
  0xb0   : > { %v410_v58 = vpop.f32.mrf.mxu1 }
  0xb1   : > { %v373_v19 = vadd.f32 %v372_v48, %v331_v11  ;;  %v461_v11 = vpop.permute.xlu2 %460 }
  0xb2   : > { %v296_v53 = vpop.f32.mrf.mxu2 }
  0xb3   : > { %v297_v61 = vadd.f32 %v296_v53, %v260_v57  ;;  %v407_v30 = vadd.f32 %v406_v49, %v373_v19 }
  0xb4   : > { %v380_v17 = vpop.f32.mrf.mxu0 }
  0xb5   : > { %v421_v40 = vmax.f32 %v407_v30, 0.0  ;;  %vm466_vm4 = vcmp.gt.f32.partialorder %v407_v30, 0.0 }
  0xb6   : > { %v336_v63 = vpop.f32.mrf.mxu3 }
  0xb7   : > { %v337_v7 = vadd.f32 %v336_v63, %v297_v61  ;;  %v441_v50 = vmul.f32 %v2693_v12, %v421_v40 }
  0xb8   : > { %v414_v23 = vpop.f32.mrf.mxu1 }
  0xb9   : > { %v377_v15 = vadd.f32 %v376_v56, %v337_v7  ;;  %v446_v55 = vsel %vm445_vm2, %v441_v50, 0.0 }
  0xba   : > { %v301_v8 = vpop.f32.mrf.mxu2 }
  0xbb   : > { %v302_v20 = vadd.f32 %v301_v8, %v264_v14  ;;  %v2705_v26 = vadd.f32 %v410_v58, %v377_v15  ;;  %v2722_v15 = vld [vmem:[%s2633_s22 + $0x4] sm:$0x1] }
  0xbc   : > { %v384_v45 = vpop.f32.mrf.mxu0 }
  0xbd   : > { %v422_v35 = vmax.f32 %v2705_v26, 0.0  ;;  %vm467_vm5 = vcmp.gt.f32.partialorder %v2705_v26, 0.0 }
  0xbe   : > { %v342_v22 = vpop.f32.mrf.mxu3 }
  0xbf   : > { %v343_v28 = vadd.f32 %v342_v22, %v302_v20  ;;  %v442_v47 = vmul.f32 %v431_v39, %v422_v35 }
  0xc0   : > { %v418_v49 = vpop.f32.mrf.mxu1 }
  0xc1   : > { %v381_v31 = vadd.f32 %v380_v17, %v343_v28  ;;  %v447_v46 = vsel %vm445_vm2, %v442_v47, 0.0 }
  0xc2   : > { %v306_v32 = vpop.f32.mrf.mxu2  ;;  %v448_v58 = vadd.f32 %v447_v46, %v446_v55 }
  0xc3   : > { %v2710_v38 = vadd.f32 %v414_v23, %v381_v31  ;;  %v307_v41 = vadd.f32 %v306_v32, %v268_v34 }
  0xc5   : > { %v423_v43 = vmax.f32 %v2710_v38, 0.0  ;;  %vm468_vm6 = vcmp.gt.f32.partialorder %v2710_v38, 0.0 }
  0xc6   : > { %v348_v44 = vpop.f32.mrf.mxu3 }
  0xc7   : > { %v349_v48 = vadd.f32 %v348_v44, %v307_v41  ;;  %v443_v51 = vmul.f32 %v435_v42, %v423_v43 }
  0xc9   : > { %v385_v52 = vadd.f32 %v384_v45, %v349_v48  ;;  %v449_v56 = vsel %vm445_vm2, %v443_v51, 0.0 }
  0xca   : > { %v450_v60 = vadd.f32 %v449_v56, %v448_v58 }
  0xcb   : > { %v2715_v53 = vadd.f32 %v418_v49, %v385_v52 }
  0xcd   : > { %v424_v57 = vmax.f32 %v2715_v53, 0.0  ;;  %vm469_vm7 = vcmp.gt.f32.partialorder %v2715_v53, 0.0 }
  0xcf   : > { %v444_v59 = vmul.f32 %v439_v54, %v424_v57 }
  0xd1   : > { %v451_v61 = vsel %vm445_vm2, %v444_v59, 0.0 }
  0xd2   : > { %v452_v62 = vadd.f32 %v451_v61, %v450_v60 }
  0xd4   : > { %v453_v63 = vrot.slane %v452_v62, 4 }
  0xd6   : > { %v454_v4 = vadd.f32 %v453_v63, %v452_v62 }
  0xd8   : > { %v455_v5 = vrot.slane %v454_v4, 2 }
  0xda   : > { %v456_v7 = vadd.f32 %v455_v5, %v454_v4 }
  0xdc   : > { %v457_v8 = vrot.slane %v456_v7, 1 }
  0xde   : > { %v458_v14 = vadd.f32 %v457_v8, %v456_v7 }
  0xe0   : > { %v463_v16 = vadd.f32 %v461_v11, %v458_v14 }
  0xe2   : > { %v464_v17 = vsub.f32 %v463_v16, %v2722_v15 }
  0xe4   : > { %v465_v18 = vmul.f32 0.03125, %v464_v17 }
  0xe6   : > { %v750_v19 = vsel %vm749_vm3, %v465_v18, 0.0  ;;  %v470_v20 = vperm.slane %v465_v18, 0 }
  0xe7   : > { %751 = vadd.xlane.f32.xlu1 %v750_v19 }
  0xe8   : > { %v734_v22 = vmul.f32 %v470_v20, %v422_v35  ;;  %v733_v23 = vmul.f32 %v470_v20, %v421_v40  ;;  %v471_v25 = vmul.f32 %v470_v20, %v2693_v12  ;;  %v736_v28 = vmul.f32 %v470_v20, %v424_v57 }
  0xe9   : > { %v472_v31 = vmul.f32 %v470_v20, %v431_v39  ;;  %v473_v44 = vmul.f32 %v470_v20, %v435_v42  ;;  %v735_v39 = vmul.f32 %v470_v20, %v423_v43  ;;  %v474_v52 = vmul.f32 %v470_v20, %v439_v54 }
  0xea   : > { %v740_v32 = vsel %vm445_vm2, %v734_v22, 0.0  ;;  %v737_v34 = vsel %vm445_vm2, %v733_v23, 0.0  ;;  %v475_v41 = vsel %vm466_vm4, %v471_v25, 0.0  ;;  %v746_v26 = vsel %vm445_vm2, %v736_v28, 0.0 }
  0xeb   : > { %741 = vadd.xlane.f32.xlu0 %v740_v32  ;;  %738 = vadd.xlane.f32.xlu2 %v737_v34  ;;  %v480_v45 = vsel %vm445_vm2, %v475_v41, 0  ;;  %v476_v47 = vsel %vm467_vm5, %v472_v31, 0.0  ;;  %v477_v48 = vsel %vm468_vm6, %v473_v44, 0.0  ;;  %v743_v38 = vsel %vm445_vm2, %v735_v39, 0.0 }
  0xec   : > { %v511_v35 = vand.u32 4294901760, %v480_v45  ;;  %v483_v40 = vsel %vm445_vm2, %v476_v47, 0  ;;  %v486_v50 = vsel %vm445_vm2, %v477_v48, 0  ;;  %v478_v56 = vsel %vm469_vm7, %v474_v52, 0.0 }
  0xed   : > { %v519_v12 = vand.u32 4294901760, %v483_v40  ;;  %v527_v55 = vand.u32 4294901760, %v486_v50  ;;  %v489_v59 = vsel %vm445_vm2, %v478_v56, 0 }
  0xee   : > { %566 = vmatmul.f32.vlgmr.msra.gmra.mxu3 %v511_v35  ;;  %v512_v30 = vsub.f32 %v480_v45, %v511_v35  ;;  %v535_v61 = vand.u32 4294901760, %v489_v59 }
  0xef   : > { %747 = vadd.xlane.f32.xlu1 %v746_v26  ;;  %980 = vmatpush.msra.mxu3 %v2638_v21  ;;  %v520_v49 = vsub.f32 %v483_v40, %v519_v12  ;;  %v528_v58 = vsub.f32 %v486_v50, %v527_v55 }
  0xf0   : > { %602 = vmatmul.f32.vlgmr.msra.gmra.mxu0 %v512_v30  ;;  %v513_v42 = vand.u32 4294901760, %v512_v30  ;;  %v536_v63 = vsub.f32 %v489_v59, %v535_v61 }
  0xf1   : > { %1024 = vmatpush.msra.mxu0 %v2650_v29  ;;  %v521_v46 = vand.u32 4294901760, %v520_v49  ;;  %v529_v60 = vand.u32 4294901760, %v528_v58 }
  0xf2   : > { %641 = vmatmul.f32.vlgmr.msra.gmra.mxu1 %v513_v42  ;;  %v514_v51 = vsub.f32 %v512_v30, %v513_v42  ;;  %v537_v4 = vand.u32 4294901760, %v536_v63 }
  0xf3   : > { %744 = vadd.xlane.f32.xlu2 %v743_v38  ;;  %1058 = vmatpush.msra.mxu1 %v2638_v21  ;;  %v522_v57 = vsub.f32 %v520_v49, %v521_v46  ;;  %v530_v62 = vsub.f32 %v528_v58, %v529_v60 }
  0xf4   : > { %v515_v43 = vand.u32 4294901760, %v514_v51  ;;  %v538_v5 = vsub.f32 %v536_v63, %v537_v4 }
  0xf5   : > { %v523_v54 = vand.u32 4294901760, %v522_v57  ;;  %v531_v53 = vand.u32 4294901760, %v530_v62 }
  0xf6   : > { %516 = vmatmul.f32.vlgmr.msra.gmra.mxu2 %v515_v43  ;;  %570 = vmatmul.f32.gmra.mxu3 %v519_v12  ;;  %v539_v7 = vand.u32 4294901760, %v538_v5 }
  0xf7   : > { %942 = vmatpush.msra.mxu2 %v2644_v27 }
  0xf8   : > { %607 = vmatmul.f32.gmra.mxu0 %v520_v49 }
  0xfa   : > { %647 = vmatmul.f32.gmra.mxu1 %v521_v46 }
  0xfe   : > { %524 = vmatmul.f32.gmra.mxu2 %v523_v54  ;;  %574 = vmatmul.f32.gmra.mxu3 %v527_v55 }
 0x100   : > { %612 = vmatmul.f32.gmra.mxu0 %v528_v58 }
 0x102   : > { %653 = vmatmul.f32.gmra.mxu1 %v529_v60 }
 0x106   : > { %532 = vmatmul.f32.gmra.mxu2 %v531_v53  ;;  %578 = vmatmul.f32.gmra.mxu3 %v535_v61 }
 0x108   : > { %617 = vmatmul.f32.gmra.mxu0 %v536_v63 }
 0x10a   : > { %659 = vmatmul.f32.gmra.mxu1 %v537_v4 }
 0x10e   : > { %540 = vmatmul.f32.gmra.mxu2 %v539_v7  ;;  %717 = vmatmul.f32.vlgmr.msrb.gmra.mxu3 %v511_v35 }
 0x10f   : > { %1215 = vmatpush.xpose.msrb.mxu3 %v2703_v24 }
 0x116   : > { %683 = vmatmul.f32.vlgmr.msrb.gmra.mxu2 %v511_v35  ;;  %721 = vmatmul.f32.gmra.mxu3 %v519_v12 }
 0x117   : > { %1161 = vmatpush.xpose.msrb.mxu2 %v2685_v3 }
 0x11e   : > { %687 = vmatmul.f32.gmra.mxu2 %v519_v12  ;;  %725 = vmatmul.f32.gmra.mxu3 %v527_v55 }
 0x126   : > { %691 = vmatmul.f32.gmra.mxu2 %v527_v55  ;;  %729 = vmatmul.f32.gmra.mxu3 %v535_v61 }
 0x12e   : > { %695 = vmatmul.f32.gmra.mxu2 %v535_v61 }
 0x15a   : > { %v752_v45 = vpop.xlane.xlu1 %751 }
 0x15b   : > { %v753_v26 = vperm.slane %v752_v45, 0 }
 0x15e   : > { %v739_v30 = vpop.xlane.xlu2 %738  ;;  %v742_v56 = vpop.xlane.xlu0 %741 }
 0x16d   : > { %v603_v20 = vpop.f32.mrf.mxu0 }
 0x16f   : > { %v642_v23 = vpop.f32.mrf.mxu1 }
 0x171   : > { %v567_v8 = vpop.f32.mrf.mxu3 }
 0x175   : > { %v608_v32 = vpop.f32.mrf.mxu0 }
 0x177   : > { %v648_v35 = vpop.f32.mrf.mxu1 }
 0x179   : > { %v517_v11 = vpop.f32.mrf.mxu2  ;;  %v571_v14 = vpop.f32.mrf.mxu3 }
 0x17a   : > { %v568_v22 = vadd.f32 %v567_v8, %v517_v11  ;;  %v745_v8 = vpop.xlane.xlu2 %744 }
 0x17c   : > { %v604_v28 = vadd.f32 %v603_v20, %v568_v22 }
 0x17d   : > { %v613_v51 = vpop.f32.mrf.mxu0 }
 0x17e   : > { %v643_v41 = vadd.f32 %v642_v23, %v604_v28 }
 0x17f   : > { %v654_v57 = vpop.f32.mrf.mxu1 }
 0x181   : > { %v525_v16 = vpop.f32.mrf.mxu2  ;;  %v575_v17 = vpop.f32.mrf.mxu3 }
 0x182   : > { %v572_v34 = vadd.f32 %v571_v14, %v525_v16 }
 0x184   : > { %v609_v40 = vadd.f32 %v608_v32, %v572_v34 }
 0x185   : > { %v618_v4 = vpop.f32.mrf.mxu0 }
 0x186   : > { %v649_v50 = vadd.f32 %v648_v35, %v609_v40 }
 0x187   : > { %v660_v14 = vpop.f32.mrf.mxu1 }
 0x189   : > { %v533_v18 = vpop.f32.mrf.mxu2  ;;  %v579_v19 = vpop.f32.mrf.mxu3 }
 0x18a   : > { %v576_v49 = vadd.f32 %v575_v17, %v533_v18 }
 0x18c   : > { %v614_v46 = vadd.f32 %v613_v51, %v576_v49 }
 0x18e   : > { %v655_v60 = vadd.f32 %v654_v57, %v614_v46 }
 0x191   : > { %v541_v25 = vpop.f32.mrf.mxu2  ;;  %v718_v31 = vpop.f32.mrf.mxu3 }
 0x192   : > { %v580_v54 = vadd.f32 %v579_v19, %v541_v25  ;;  %v748_v25 = vpop.xlane.xlu1 %747 }
 0x194   : > { %v619_v5 = vadd.f32 %v618_v4, %v580_v54 }
 0x196   : > { %v661_v17 = vadd.f32 %v660_v14, %v619_v5 }
 0x199   : > { %v684_v44 = vpop.f32.mrf.mxu2  ;;  %v722_v48 = vpop.f32.mrf.mxu3 }
 0x19a   : > { %v685_v47 = vadd.f32 %v684_v44, %v643_v41 }
 0x19c   : > { %v719_v12 = vadd.f32 %v718_v31, %v685_v47 }
 0x19e   : > { %v755_v39 = vsel %vm754_vm8, %v719_v12, %v739_v30 }
 0x19f   : > { %v760_v42 = vsel %vm759_vm9, %v755_v39, %v753_v26 }
 0x1a0   : > { %v765_v38 = vsel %vm764_vm10, %v760_v42, 0.0 }
 0x1a1   : > { %v688_v52 = vpop.f32.mrf.mxu2  ;;  %773 = vrot.lane.b32.xlu2 %v765_v38, %s2556_s23  ;;  %v726_v62 = vpop.f32.mrf.mxu3 }
 0x1a2   : > { %v689_v43 = vadd.f32 %v688_v52, %v649_v50 }
 0x1a4   : > { %v723_v55 = vadd.f32 %v722_v48, %v689_v43 }
 0x1a6   : > { %v756_v58 = vsel %vm754_vm8, %v723_v55, %v742_v56 }
 0x1a7   : > { %v761_v59 = vsel %vm759_vm9, %v756_v58, %v753_v26 }
 0x1a8   : > { %v766_v61 = vsel %vm764_vm10, %v761_v59, 0.0 }
 0x1a9   : > { %v692_v63 = vpop.f32.mrf.mxu2  ;;  %775 = vrot.lane.b32.xlu0 %v766_v61, %s2556_s23  ;;  %v730_v22 = vpop.f32.mrf.mxu3 }
 0x1aa   : > { %v693_v53 = vadd.f32 %v692_v63, %v655_v60 }
 0x1ac   : > { %v727_v7 = vadd.f32 %v726_v62, %v693_v53 }
 0x1ae   : > { %v757_v11 = vsel %vm754_vm8, %v727_v7, %v745_v8 }
 0x1af   : > { %v762_v16 = vsel %vm759_vm9, %v757_v11, %v753_v26 }
 0x1b0   : > { %v767_v18 = vsel %vm764_vm10, %v762_v16, 0.0 }
 0x1b1   : > { %v696_v19 = vpop.f32.mrf.mxu2  ;;  %777 = vrot.lane.b32.xlu1 %v767_v18, %s2556_s23 }
 0x1b2   : > { %v697_v20 = vadd.f32 %v696_v19, %v661_v17 }
 0x1b4   : > { %v731_v23 = vadd.f32 %v730_v22, %v697_v20 }
 0x1b6   : > { %v758_v28 = vsel %vm754_vm8, %v731_v23, %v748_v25 }
 0x1b7   : > { %v763_v31 = vsel %vm759_vm9, %v758_v28, %v753_v26 }
 0x1b8   : > { %v768_v32 = vsel %vm764_vm10, %v763_v31, 0.0 }
 0x1b9   : > { %779 = vrot.lane.b32.xlu0 %v768_v32, %s2556_s23 }
 0x1fb   : > { %v774_v34 = vpop.permute.xlu2 %773 }
 0x1fc   : > { %v785_v41 = vmul.f32 %v774_v34, %v2598_v2 }
 0x1fe   : > { %793 = vrot.lane.b32.xlu2 %v785_v41, %s2557_s24 }
 0x21b   : > { %v776_v44 = vpop.permute.xlu0 %775 }
 0x21c   : > { %v786_v45 = vmul.f32 %v776_v44, %v2609_v6 }
 0x21e   : > { %795 = vrot.lane.b32.xlu1 %v786_v45, %s2557_s24 }
 0x223   : > { %v778_v47 = vpop.permute.xlu1 %777 }
 0x224   : > { %v787_v35 = vmul.f32 %v778_v47, %v2588_v0 }
 0x226   : > { %797 = vrot.lane.b32.xlu0 %v787_v35, %s2557_s24 }
 0x22b   : > { %v780_v40 = vpop.permute.xlu0 %779 }
 0x22c   : > { %v788_v12 = vmul.f32 %v780_v40, %v2593_v1 }
 0x22e   : > { %799 = vrot.lane.b32.xlu2 %v788_v12, %s2557_s24 }
 0x258   : > { %v794_v26 = vpop.permute.xlu2 %793 }
 0x259   : > { %v2765_v30 = vsub.f32 %v2598_v2, %v794_v26 }
 0x25b   : > { %811 = vperm.xlu1 %2518, %v2765_v30   ;;  %v829_v39 = vsel %vm169_vm0, %v2765_v30, 0 }
 0x25c   : > { %v2770_v48 = vand.u32 4294901760, %v829_v39 }
 0x25e   : > { %909 = vmatmul.f32.vlgmr.msrb.gmra.mxu1 %v2770_v48  ;;  %v855_v42 = vsub.f32 %v829_v39, %v2770_v48 }
 0x25f   : > { %1288 = vmatpush.xpose.msrb.mxu1 %v2685_v3 }
 0x260   : > { %945 = vmatmul.f32.vlgmr.msra.gmra.mxu2 %v855_v42  ;;  %v856_v49 = vand.u32 4294901760, %v855_v42 }
 0x261   : > { %1332 = vmatpush.xpose.msra.mxu2 %v2696_v13 }
 0x262   : > { %984 = vmatmul.f32.vlgmr.msra.gmra.mxu3 %v856_v49  ;;  %v857_v2 = vsub.f32 %v855_v42, %v856_v49 }
 0x263   : > { %1366 = vmatpush.xpose.msra.mxu3 %v2685_v3 }
 0x264   : > { %v858_v50 = vand.u32 4294901760, %v857_v2 }
 0x266   : > { %859 = vmatmul.f32.vlgmr.msrb.gmra.mxu0 %v858_v50 }
 0x267   : > { %1250 = vmatpush.xpose.msrb.mxu0 %v2689_v9 }
 0x288   : > { %v800_v38 = vpop.permute.xlu2 %799 }
 0x289   : > { %v2779_v51 = vsub.f32 %v2593_v1, %v800_v38 }
 0x28b   : > { %826 = vperm.xlu1 %2518, %v2779_v51  }
 0x290   : > { %v796_v52 = vpop.permute.xlu1 %795 }
 0x291   : > { %v2783_v43 = vsub.f32 %v2609_v6, %v796_v52  ;;  %v835_v6 = vsel %vm169_vm0, %v2779_v51, 0 }
 0x293   : > { %816 = vperm.xlu0 %2519, %v2783_v43   ;;  %2522 = vset.pattern.permute.xlu1 %v2554_v36  ;;  %v831_v46 = vsel %vm169_vm0, %v2783_v43, 0 }
 0x294   : > { %1085 = vperm.xlu1 %2522, %v2783_v43   ;;  %v862_v55 = vand.u32 4294901760, %v831_v46 }
 0x296   : > { %913 = vmatmul.f32.gmra.mxu1 %v862_v55  ;;  %v863_v56 = vsub.f32 %v831_v46, %v862_v55 }
 0x298   : > { %950 = vmatmul.f32.gmra.mxu2 %v863_v56  ;;  %v798_v1 = vpop.permute.xlu0 %797  ;;  %v864_v57 = vand.u32 4294901760, %v863_v56 }
 0x299   : > { %v2791_v58 = vsub.f32 %v2588_v0, %v798_v1  ;;  %v878_v0 = vand.u32 4294901760, %v835_v6 }
 0x29a   : > { %990 = vmatmul.f32.gmra.mxu3 %v864_v57  ;;  %v865_v59 = vsub.f32 %v863_v56, %v864_v57 }
 0x29b   : > { %2523 = vset.pattern.permute.xlu0 %v2554_v36  ;;  %821 = vperm.xlu2 %2520, %v2791_v58   ;;  %v833_v54 = vsel %vm169_vm0, %v2791_v58, 0  ;;  %v879_v53 = vsub.f32 %v835_v6, %v878_v0 }
 0x29c   : > { %2524 = vset.pattern.permute.xlu1 %v2555_v37  ;;  %1089 = vperm.xlu0 %2523, %v2791_v58   ;;  %v866_v60 = vand.u32 4294901760, %v865_v59  ;;  %v870_v61 = vand.u32 4294901760, %v833_v54 }
 0x29d   : > { %1114 = vperm.xlu1 %2524, %v2765_v30   ;;  %v880_v7 = vand.u32 4294901760, %v879_v53 }
 0x29e   : > { %867 = vmatmul.f32.gmra.mxu0 %v866_v60  ;;  %917 = vmatmul.f32.gmra.mxu1 %v870_v61  ;;  %v871_v62 = vsub.f32 %v833_v54, %v870_v61 }
 0x29f   : > { %v881_v8 = vsub.f32 %v879_v53, %v880_v7 }
 0x2a0   : > { %955 = vmatmul.f32.gmra.mxu2 %v871_v62  ;;  %v872_v63 = vand.u32 4294901760, %v871_v62 }
 0x2a1   : > { %v882_v11 = vand.u32 4294901760, %v881_v8 }
 0x2a2   : > { %996 = vmatmul.f32.gmra.mxu3 %v872_v63  ;;  %v873_v4 = vsub.f32 %v871_v62, %v872_v63 }
 0x2a3   : > { %2521 = vset.pattern.permute.xlu2 %v2554_v36 }
 0x2a4   : > { %1081 = vperm.xlu2 %2521, %v2765_v30   ;;  %v874_v5 = vand.u32 4294901760, %v873_v4  ;;  %2525 = vset.pattern.permute.xlu0 %v2553_v10 }
 0x2a5   : > { %2526 = vset.pattern.permute.xlu1 %v2553_v10 }
 0x2a6   : > { %875 = vmatmul.f32.gmra.mxu0 %v874_v5  ;;  %921 = vmatmul.f32.gmra.mxu1 %v878_v0 }
 0x2a8   : > { %960 = vmatmul.f32.gmra.mxu2 %v879_v53 }
 0x2aa   : > { %1002 = vmatmul.f32.gmra.mxu3 %v880_v7 }
 0x2ac   : > { %1093 = vperm.xlu2 %2521, %v2779_v51  }
 0x2ae   : > { %883 = vmatmul.f32.gmra.mxu0 %v882_v11  ;;  %1060 = vmatmul.f32.vlgmr.msra.gmra.mxu1 %v2770_v48 }
 0x2af   : > { %1554 = vmatpush.msra.mxu1 %v2657_v33 }
 0x2b4   : > { %2527 = vset.pattern.permute.xlu2 %v2553_v10 }
 0x2b6   : > { %1026 = vmatmul.f32.vlgmr.msra.gmra.mxu0 %v2770_v48  ;;  %1064 = vmatmul.f32.gmra.mxu1 %v862_v55 }
 0x2b7   : > { %1500 = vmatpush.msra.mxu0 %v2638_v21 }
 0x2be   : > { %1030 = vmatmul.f32.gmra.mxu0 %v862_v55  ;;  %1068 = vmatmul.f32.gmra.mxu1 %v870_v61 }
 0x2c6   : > { %1034 = vmatmul.f32.gmra.mxu0 %v870_v61  ;;  %1072 = vmatmul.f32.gmra.mxu1 %v878_v0 }
 0x2cd   : > { %v812_v34 = vpop.permute.xlu1 %811 }
 0x2ce   : > { %1038 = vmatmul.f32.gmra.mxu0 %v878_v0 }
 0x2db   : > { %v910_v14 = vpop.f32.mrf.mxu1 }
 0x2e3   : > { %v860_v16 = vpop.f32.mrf.mxu0  ;;  %v946_v33 = vpop.f32.mrf.mxu2 }
 0x2e4   : > { %v861_v44 = vadd.f32 %v860_v16, %v812_v34 }
 0x2e5   : > { %v985_v25 = vpop.f32.mrf.mxu3 }
 0x2e6   : > { %v911_v12 = vadd.f32 %v910_v14, %v861_v44 }
 0x2e8   : > { %v947_v42 = vadd.f32 %v946_v33, %v911_v12 }
 0x2ea   : > { %v986_v46 = vadd.f32 %v985_v25, %v947_v42 }
 0x2f5   : > { %v822_v35 = vpop.permute.xlu2 %821 }
 0x2fd   : > { %v827_v52 = vpop.permute.xlu1 %826 }
 0x2fe   : > { %v1082_v8 = vpop.permute.xlu2 %1081 }
 0x305   : > { %v817_v28 = vpop.permute.xlu0 %816 }
 0x306   : > { %v1086_v16 = vpop.permute.xlu1 %1085 }
 0x313   : > { %v914_v17 = vpop.f32.mrf.mxu1 }
 0x31b   : > { %v868_v18 = vpop.f32.mrf.mxu0  ;;  %v918_v19 = vpop.f32.mrf.mxu1 }
 0x31c   : > { %v869_v32 = vadd.f32 %v868_v18, %v817_v28  ;;  %v951_v41 = vpop.f32.mrf.mxu2 }
 0x31d   : > { %v991_v40 = vpop.f32.mrf.mxu3 }
 0x31e   : > { %v915_v47 = vadd.f32 %v914_v17, %v869_v32 }
 0x320   : > { %v952_v39 = vadd.f32 %v951_v41, %v915_v47 }
 0x322   : > { %v992_v38 = vadd.f32 %v991_v40, %v952_v39 }
 0x323   : > { %v876_v20 = vpop.f32.mrf.mxu0  ;;  %v922_v22 = vpop.f32.mrf.mxu1 }
 0x324   : > { %v877_v26 = vadd.f32 %v876_v20, %v822_v35  ;;  %v956_v2 = vpop.f32.mrf.mxu2  ;;  %v1090_v20 = vpop.permute.xlu0 %1089 }
 0x325   : > { %v997_v57 = vpop.f32.mrf.mxu3 }
 0x326   : > { %v919_v49 = vadd.f32 %v918_v19, %v877_v26 }
 0x328   : > { %v957_v55 = vadd.f32 %v956_v2, %v919_v49 }
 0x32a   : > { %v998_v59 = vadd.f32 %v997_v57, %v957_v55 }
 0x32b   : > { %v884_v23 = vpop.f32.mrf.mxu0  ;;  %v1061_v31 = vpop.f32.mrf.mxu1 }
 0x32c   : > { %v885_v56 = vadd.f32 %v884_v23, %v827_v52  ;;  %v961_v53 = vpop.f32.mrf.mxu2 }
 0x32d   : > { %v1003_v17 = vpop.f32.mrf.mxu3 }
 0x32e   : > { %v923_v54 = vadd.f32 %v922_v22, %v885_v56 }
 0x330   : > { %v962_v4 = vadd.f32 %v961_v53, %v923_v54 }
 0x332   : > { %v1004_v18 = vadd.f32 %v1003_v17, %v962_v4 }
 0x333   : > { %v1027_v45 = vpop.f32.mrf.mxu0  ;;  %v1065_v48 = vpop.f32.mrf.mxu1 }
 0x334   : > { %v1028_v6 = vadd.f32 %v1027_v45, %v986_v46  ;;  %v1094_v45 = vpop.permute.xlu2 %1093 }
 0x336   : > { %v1062_v62 = vadd.f32 %v1061_v31, %v1028_v6 }
 0x338   : > { %v1076_v11 = vmax.f32 %v1062_v62, 0.0  ;;  %vm1120_vm11 = vcmp.gt.f32.partialorder %v1062_v62, 0.0 }
 0x33a   : > { %v1096_v23 = vmul.f32 %v1082_v8, %v1076_v11 }
 0x33b   : > { %v1031_v50 = vpop.f32.mrf.mxu0  ;;  %v1069_v61 = vpop.f32.mrf.mxu1 }
 0x33c   : > { %v1032_v1 = vadd.f32 %v1031_v50, %v992_v38  ;;  %v1100_v34 = vsel %vm445_vm2, %v1096_v23, 0.0  ;;  %v1115_v38 = vpop.permute.xlu1 %1114 }
 0x33e   : > { %v1066_v60 = vadd.f32 %v1065_v48, %v1032_v1 }
 0x340   : > { %v1077_v5 = vmax.f32 %v1066_v60, 0.0  ;;  %vm1121_vm12 = vcmp.gt.f32.partialorder %v1066_v60, 0.0 }
 0x342   : > { %v1097_v19 = vmul.f32 %v1086_v16, %v1077_v5 }
 0x343   : > { %v1035_v0 = vpop.f32.mrf.mxu0  ;;  %v1073_v28 = vpop.f32.mrf.mxu1 }
 0x344   : > { %v1036_v63 = vadd.f32 %v1035_v0, %v998_v59  ;;  %v1101_v31 = vsel %vm445_vm2, %v1097_v19, 0.0 }
 0x345   : > { %v1102_v47 = vadd.f32 %v1101_v31, %v1100_v34 }
 0x346   : > { %v1070_v7 = vadd.f32 %v1069_v61, %v1036_v63 }
 0x348   : > { %v1078_v14 = vmax.f32 %v1070_v7, 0.0  ;;  %vm1122_vm13 = vcmp.gt.f32.partialorder %v1070_v7, 0.0 }
 0x34a   : > { %v1098_v22 = vmul.f32 %v1090_v20, %v1078_v14 }
 0x34b   : > { %v1039_v33 = vpop.f32.mrf.mxu0 }
 0x34c   : > { %v1040_v25 = vadd.f32 %v1039_v33, %v1004_v18  ;;  %v1103_v41 = vsel %vm445_vm2, %v1098_v22, 0.0 }
 0x34d   : > { %v1104_v40 = vadd.f32 %v1103_v41, %v1102_v47 }
 0x34e   : > { %v2813_v32 = vadd.f32 %v1073_v28, %v1040_v25 }
 0x350   : > { %v1079_v44 = vmax.f32 %v2813_v32, 0.0  ;;  %vm1123_vm14 = vcmp.gt.f32.partialorder %v2813_v32, 0.0 }
 0x352   : > { %v1099_v35 = vmul.f32 %v1094_v45, %v1079_v44 }
 0x354   : > { %v1105_v12 = vsel %vm445_vm2, %v1099_v35, 0.0 }
 0x355   : > { %v1106_v26 = vadd.f32 %v1105_v12, %v1104_v40 }
 0x357   : > { %v1107_v39 = vrot.slane %v1106_v26, 4 }
 0x359   : > { %v1108_v48 = vadd.f32 %v1107_v39, %v1106_v26 }
 0x35b   : > { %v1109_v42 = vrot.slane %v1108_v48, 2 }
 0x35d   : > { %v1110_v49 = vadd.f32 %v1109_v42, %v1108_v48 }
 0x35f   : > { %v1111_v2 = vrot.slane %v1110_v49, 1 }
 0x361   : > { %v1112_v50 = vadd.f32 %v1111_v2, %v1110_v49 }
 0x363   : > { %v1117_v52 = vadd.f32 %v1115_v38, %v1112_v50 }
 0x365   : > { %v1118_v46 = vsub.f32 %v1117_v52, %v2722_v15 }
 0x367   : > { %v1119_v55 = vmul.f32 0.03125, %v1118_v46 }
 0x369   : > { %v1400_v56 = vsel %vm749_vm3, %v1119_v55, 0.0  ;;  %v1124_v1 = vperm.slane %v1119_v55, 0 }
 0x36a   : > { %1401 = vadd.xlane.f32.xlu2 %v1400_v56 }
 0x36b   : > { %v1385_v57 = vmul.f32 %v1124_v1, %v1077_v5  ;;  %v1384_v6 = vmul.f32 %v1124_v1, %v1076_v11  ;;  %v1125_v59 = vmul.f32 %v1124_v1, %v1082_v8  ;;  %v1386_v54 = vmul.f32 %v1124_v1, %v1078_v14 }
 0x36c   : > { %v1126_v61 = vmul.f32 %v1124_v1, %v1086_v16  ;;  %v1127_v4 = vmul.f32 %v1124_v1, %v1090_v20  ;;  %v1387_v11 = vmul.f32 %v1124_v1, %v1079_v44  ;;  %v1128_v23 = vmul.f32 %v1124_v1, %v1094_v45 }
 0x36d   : > { %v1391_v0 = vsel %vm445_vm2, %v1385_v57, 0.0  ;;  %v1388_v63 = vsel %vm445_vm2, %v1384_v6, 0.0  ;;  %v1129_v53 = vsel %vm1120_vm11, %v1125_v59, 0.0  ;;  %v1394_v60 = vsel %vm445_vm2, %v1386_v54, 0.0 }
 0x36e   : > { %1392 = vadd.xlane.f32.xlu0 %v1391_v0  ;;  %1389 = vadd.xlane.f32.xlu1 %v1388_v63  ;;  %v1134_v15 = vsel %vm445_vm2, %v1129_v53, 0  ;;  %v1130_v17 = vsel %vm1121_vm12, %v1126_v61, 0.0  ;;  %v1131_v14 = vsel %vm1122_vm13, %v1127_v4, 0.0  ;;  %v1397_v7 = vsel %vm445_vm2, %v1387_v11, 0.0 }
 0x36f   : > { %v1162_v18 = vand.u32 4294901760, %v1134_v15  ;;  %v1137_v5 = vsel %vm445_vm2, %v1130_v17, 0  ;;  %v1140_v20 = vsel %vm445_vm2, %v1131_v14, 0  ;;  %v1132_v31 = vsel %vm1123_vm14, %v1128_v23, 0.0 }
 0x370   : > { %v1170_v8 = vand.u32 4294901760, %v1137_v5  ;;  %v1178_v28 = vand.u32 4294901760, %v1140_v20  ;;  %v1143_v41 = vsel %vm445_vm2, %v1132_v31, 0 }
 0x371   : > { %1217 = vmatmul.f32.vlgmr.msrb.gmra.mxu3 %v1162_v18  ;;  %v1163_v62 = vsub.f32 %v1134_v15, %v1162_v18  ;;  %v1186_v47 = vand.u32 4294901760, %v1143_v41 }
 0x372   : > { %1395 = vadd.xlane.f32.xlu2 %v1394_v60  ;;  %1627 = vmatpush.msrb.mxu3 %v2638_v21  ;;  %v1171_v19 = vsub.f32 %v1137_v5, %v1170_v8  ;;  %v1179_v34 = vsub.f32 %v1140_v20, %v1178_v28 }
 0x373   : > { %1253 = vmatmul.f32.vlgmr.msrb.gmra.mxu0 %v1163_v62  ;;  %v1164_v16 = vand.u32 4294901760, %v1163_v62  ;;  %v1187_v35 = vsub.f32 %v1143_v41, %v1186_v47 }
 0x374   : > { %1671 = vmatpush.msrb.mxu0 %v2650_v29  ;;  %v1172_v25 = vand.u32 4294901760, %v1171_v19  ;;  %v1180_v45 = vand.u32 4294901760, %v1179_v34 }
 0x375   : > { %1292 = vmatmul.f32.vlgmr.msrb.gmra.mxu1 %v1164_v16  ;;  %v1165_v33 = vsub.f32 %v1163_v62, %v1164_v16  ;;  %v1188_v40 = vand.u32 4294901760, %v1187_v35 }
 0x376   : > { %1398 = vadd.xlane.f32.xlu1 %v1397_v7  ;;  %1705 = vmatpush.msrb.mxu1 %v2638_v21  ;;  %v1173_v29 = vsub.f32 %v1171_v19, %v1172_v25  ;;  %v1181_v21 = vsub.f32 %v1179_v34, %v1180_v45 }
 0x377   : > { %v1166_v22 = vand.u32 4294901760, %v1165_v33 }
 0x378   : > { %v1174_v44 = vand.u32 4294901760, %v1173_v29  ;;  %v1182_v32 = vand.u32 4294901760, %v1181_v21 }
 0x379   : > { %1167 = vmatmul.f32.vlgmr.msrb.gmra.mxu2 %v1166_v22  ;;  %1221 = vmatmul.f32.gmra.mxu3 %v1170_v8 }
 0x37a   : > { %1589 = vmatpush.msrb.mxu2 %v2644_v27  ;;  %v1189_v27 = vsub.f32 %v1187_v35, %v1188_v40 }
 0x37b   : > { %1258 = vmatmul.f32.gmra.mxu0 %v1171_v19 }
 0x37c   : > { %v1190_v12 = vand.u32 4294901760, %v1189_v27 }
 0x37d   : > { %1298 = vmatmul.f32.gmra.mxu1 %v1172_v25 }
 0x381   : > { %1175 = vmatmul.f32.gmra.mxu2 %v1174_v44  ;;  %1225 = vmatmul.f32.gmra.mxu3 %v1178_v28 }
 0x383   : > { %1263 = vmatmul.f32.gmra.mxu0 %v1179_v34 }
 0x385   : > { %1304 = vmatmul.f32.gmra.mxu1 %v1180_v45 }
 0x389   : > { %1183 = vmatmul.f32.gmra.mxu2 %v1182_v32  ;;  %1229 = vmatmul.f32.gmra.mxu3 %v1186_v47 }
 0x38b   : > { %1268 = vmatmul.f32.gmra.mxu0 %v1187_v35 }
 0x38d   : > { %1310 = vmatmul.f32.gmra.mxu1 %v1188_v40 }
 0x391   : > { %1191 = vmatmul.f32.gmra.mxu2 %v1190_v12  ;;  %1368 = vmatmul.f32.vlgmr.msra.gmra.mxu3 %v1162_v18 }
 0x392   : > { %1862 = vmatpush.xpose.msra.mxu3 %v2703_v24 }
 0x399   : > { %1334 = vmatmul.f32.vlgmr.msra.gmra.mxu2 %v1162_v18  ;;  %1372 = vmatmul.f32.gmra.mxu3 %v1170_v8 }
 0x39a   : > { %1808 = vmatpush.xpose.msra.mxu2 %v2685_v3 }
 0x3a1   : > { %1338 = vmatmul.f32.gmra.mxu2 %v1170_v8  ;;  %1376 = vmatmul.f32.gmra.mxu3 %v1178_v28 }
 0x3a9   : > { %1342 = vmatmul.f32.gmra.mxu2 %v1178_v28  ;;  %1380 = vmatmul.f32.gmra.mxu3 %v1186_v47 }
 0x3b1   : > { %1346 = vmatmul.f32.gmra.mxu2 %v1186_v47 }
 0x3dd   : > { %v1402_v54 = vpop.xlane.xlu2 %1401 }
 0x3de   : > { %v1403_v4 = vperm.slane %v1402_v54, 0 }
 0x3e1   : > { %v1390_v15 = vpop.xlane.xlu1 %1389  ;;  %v1393_v7 = vpop.xlane.xlu0 %1392 }
 0x3e5   : > { %v1396_v21 = vpop.xlane.xlu2 %1395 }
 0x3f0   : > { %v1254_v38 = vpop.f32.mrf.mxu0 }
 0x3f2   : > { %v1293_v46 = vpop.f32.mrf.mxu1 }
 0x3f4   : > { %v1218_v26 = vpop.f32.mrf.mxu3 }
 0x3f8   : > { %v1259_v1 = vpop.f32.mrf.mxu0 }
 0x3fa   : > { %v1299_v0 = vpop.f32.mrf.mxu1 }
 0x3fc   : > { %v1168_v39 = vpop.f32.mrf.mxu2  ;;  %v1222_v48 = vpop.f32.mrf.mxu3 }
 0x3fd   : > { %v1219_v52 = vadd.f32 %v1218_v26, %v1168_v39 }
 0x3ff   : > { %v1255_v55 = vadd.f32 %v1254_v38, %v1219_v52 }
 0x400   : > { %v1264_v11 = vpop.f32.mrf.mxu0 }
 0x401   : > { %v1294_v6 = vadd.f32 %v1293_v46, %v1255_v55  ;;  %v2855_v46 = vld [vmem:[%s3003_s1 + $0x8] sm:$0xff] }
 0x402   : > { %v1305_v33 = vpop.f32.mrf.mxu1 }
 0x404   : > { %v1176_v42 = vpop.f32.mrf.mxu2  ;;  %v1226_v49 = vpop.f32.mrf.mxu3 }
 0x405   : > { %v1223_v57 = vadd.f32 %v1222_v48, %v1176_v42 }
 0x407   : > { %v1260_v63 = vadd.f32 %v1259_v1, %v1223_v57 }
 0x408   : > { %v1269_v44 = vpop.f32.mrf.mxu0 }
 0x409   : > { %v1300_v60 = vadd.f32 %v1299_v0, %v1260_v63 }
 0x40a   : > { %v1311_v32 = vpop.f32.mrf.mxu1 }
 0x40c   : > { %v1184_v2 = vpop.f32.mrf.mxu2  ;;  %v1230_v50 = vpop.f32.mrf.mxu3 }
 0x40d   : > { %v1227_v8 = vadd.f32 %v1226_v49, %v1184_v2  ;;  %v1399_v49 = vpop.xlane.xlu1 %1398 }
 0x40f   : > { %v1265_v19 = vadd.f32 %v1264_v11, %v1227_v8 }
 0x411   : > { %v1306_v28 = vadd.f32 %v1305_v33, %v1265_v19 }
 0x414   : > { %v1192_v24 = vpop.f32.mrf.mxu2  ;;  %v1369_v56 = vpop.f32.mrf.mxu3 }
 0x415   : > { %v1231_v25 = vadd.f32 %v1230_v50, %v1192_v24 }
 0x417   : > { %v1270_v45 = vadd.f32 %v1269_v44, %v1231_v25 }
 0x419   : > { %v1312_v27 = vadd.f32 %v1311_v32, %v1270_v45 }
 0x41c   : > { %v1335_v59 = vpop.f32.mrf.mxu2  ;;  %v1373_v18 = vpop.f32.mrf.mxu3 }
 0x41d   : > { %v1336_v61 = vadd.f32 %v1335_v59, %v1294_v6  ;;  %v2867_v6 = vld [vmem:[%s3003_s1 + $0x10] sm:$0xff] }
 0x41f   : > { %v1370_v53 = vadd.f32 %v1369_v56, %v1336_v61  ;;  %v2861_v56 = vld [vmem:[%s3003_s1] sm:$0xff]  ;;  %v2873_v61 = vld [vmem:[%s3003_s1 + $0x18] sm:$0xff] }
 0x421   : > { %v1404_v17 = vsel %vm754_vm8, %v1370_v53, %v1390_v15 }
 0x422   : > { %v1408_v5 = vsel %vm759_vm9, %v1404_v17, %v1403_v4 }
 0x423   : > { %v1412_v62 = vsel %vm764_vm10, %v1408_v5, 0.0 }
 0x424   : > { %v1339_v14 = vpop.f32.mrf.mxu2  ;;  %1420 = vrot.lane.b32.xlu0 %v1412_v62, %s2558_s25  ;;  %v1377_v29 = vpop.f32.mrf.mxu3 }
 0x425   : > { %v1340_v16 = vadd.f32 %v1339_v14, %v1300_v60 }
 0x427   : > { %v1374_v20 = vadd.f32 %v1373_v18, %v1340_v16 }
 0x429   : > { %v1405_v23 = vsel %vm754_vm8, %v1374_v20, %v1393_v7 }
 0x42a   : > { %v1409_v22 = vsel %vm759_vm9, %v1405_v23, %v1403_v4 }
 0x42b   : > { %v1413_v31 = vsel %vm764_vm10, %v1409_v22, 0.0 }
 0x42c   : > { %v1343_v34 = vpop.f32.mrf.mxu2  ;;  %1422 = vrot.lane.b32.xlu2 %v1413_v31, %s2558_s25  ;;  %v1381_v48 = vpop.f32.mrf.mxu3 }
 0x42d   : > { %v1344_v41 = vadd.f32 %v1343_v34, %v1306_v28 }
 0x42f   : > { %v1378_v47 = vadd.f32 %v1377_v29, %v1344_v41 }
 0x431   : > { %v1406_v35 = vsel %vm754_vm8, %v1378_v47, %v1396_v21 }
 0x432   : > { %v1410_v40 = vsel %vm759_vm9, %v1406_v35, %v1403_v4 }
 0x433   : > { %v1414_v12 = vsel %vm764_vm10, %v1410_v40, 0.0 }
 0x434   : > { %v1347_v26 = vpop.f32.mrf.mxu2  ;;  %1424 = vrot.lane.b32.xlu1 %v1414_v12, %s2558_s25 }
 0x435   : > { %v1348_v39 = vadd.f32 %v1347_v26, %v1312_v27 }
 0x437   : > { %v1382_v42 = vadd.f32 %v1381_v48, %v1348_v39 }
 0x439   : > { %v1407_v2 = vsel %vm754_vm8, %v1382_v42, %v1399_v49 }
 0x43a   : > { %v1411_v50 = vsel %vm759_vm9, %v1407_v2, %v1403_v4 }
 0x43b   : > { %v1415_v38 = vsel %vm764_vm10, %v1411_v50, 0.0 }
 0x43c   : > { %1426 = vrot.lane.b32.xlu0 %v1415_v38, %s2558_s25 }
 0x486   : > { %v1423_v52 = vpop.permute.xlu2 %1422 }
 0x487   : > { %v1433_v24 = vmul.f32 %v2855_v46, %v1423_v52 }
 0x489   : > { %1442 = vrot.lane.b32.xlu0 %v1433_v24, %s2559_s28 }
 0x496   : > { %v1421_v55 = vpop.permute.xlu0 %1420 }
 0x497   : > { %v1432_v1 = vmul.f32 %v2861_v56, %v1421_v55 }
 0x499   : > { %1440 = vrot.lane.b32.xlu2 %v1432_v1, %s2559_s28 }
 0x4a6   : > { %v1425_v57 = vpop.permute.xlu1 %1424 }
 0x4a7   : > { %v1434_v59 = vmul.f32 %v2867_v6, %v1425_v57 }
 0x4a9   : > { %1444 = vrot.lane.b32.xlu1 %v1434_v59, %s2559_s28 }
 0x4ae   : > { %v1427_v54 = vpop.permute.xlu0 %1426 }
 0x4af   : > { %v1435_v0 = vmul.f32 %v2873_v61, %v1427_v54 }
 0x4b1   : > { %1446 = vrot.lane.b32.xlu2 %v1435_v0, %s2559_s28 }
 0x4f3   : > { %v1441_v63 = vpop.permute.xlu2 %1440 }
 0x4f4   : > { %v2877_v53 = vsub.f32 %v2765_v30, %v1441_v63 }
 0x4f6   : > { %1458 = vperm.xlu0 %2525, %v2877_v53   ;;  %v1476_v4 = vsel %vm169_vm0, %v2877_v53, 0 }
 0x4f7   : > { %v2882_v15 = vand.u32 4294901760, %v1476_v4 }
 0x4f9   : > { %v1502_v17 = vsub.f32 %v1476_v4, %v2882_v15  ;;  %1556 = vmatmul.f32.vlgmr.msra.gmra.mxu1 %v2882_v15 }
 0x4fa   : > { %1935 = vmatpush.xpose.msra.mxu1 %v2685_v3 }
 0x4fb   : > { %1592 = vmatmul.f32.vlgmr.msrb.gmra.mxu2 %v1502_v17  ;;  %v1443_v18 = vpop.permute.xlu0 %1442  ;;  %v1503_v5 = vand.u32 4294901760, %v1502_v17 }
 0x4fc   : > { %v2888_v8 = vsub.f32 %v2783_v43, %v1443_v18  ;;  %1979 = vmatpush.xpose.msrb.mxu2 %v2696_v13 }
 0x4fd   : > { %1631 = vmatmul.f32.vlgmr.msrb.gmra.mxu3 %v1503_v5  ;;  %v1504_v30 = vsub.f32 %v1502_v17, %v1503_v5 }
 0x4fe   : > { %2529 = vset.pattern.permute.xlu0 %v2554_v36  ;;  %1463 = vperm.xlu1 %2526, %v2888_v8   ;;  %v1478_v60 = vsel %vm169_vm0, %v2888_v8, 0 }
 0x4ff   : > { %1732 = vperm.xlu0 %2529, %v2888_v8   ;;  %v1505_v62 = vand.u32 4294901760, %v1504_v30  ;;  %v1509_v11 = vand.u32 4294901760, %v1478_v60  ;;  %2013 = vmatpush.xpose.msrb.mxu3 %v2685_v3 }
 0x501   : > { %1506 = vmatmul.f32.vlgmr.msra.gmra.mxu0 %v1505_v62  ;;  %1560 = vmatmul.f32.gmra.mxu1 %v1509_v11  ;;  %v1510_v43 = vsub.f32 %v1478_v60, %v1509_v11 }
 0x502   : > { %1897 = vmatpush.xpose.msra.mxu0 %v2689_v9 }
 0x503   : > { %1597 = vmatmul.f32.gmra.mxu2 %v1510_v43  ;;  %v1511_v13 = vand.u32 4294901760, %v1510_v43 }
 0x505   : > { %1637 = vmatmul.f32.gmra.mxu3 %v1511_v13  ;;  %v1512_v14 = vsub.f32 %v1510_v43, %v1511_v13 }
 0x507   : > { %v1513_v16 = vand.u32 4294901760, %v1512_v14  ;;  %2534 = vset.pattern.permute.xlu0 %v2553_v10 }
 0x509   : > { %1514 = vmatmul.f32.gmra.mxu0 %v1513_v16 }
 0x50b   : > { %v1447_v19 = vpop.permute.xlu2 %1446 }
 0x50c   : > { %v2900_v20 = vsub.f32 %v2779_v51, %v1447_v19 }
 0x50e   : > { %1473 = vperm.xlu1 %2526, %v2900_v20   ;;  %v1482_v9 = vsel %vm169_vm0, %v2900_v20, 0 }
 0x50f   : > { %v1525_v23 = vand.u32 4294901760, %v1482_v9 }
 0x511   : > { %v1526_v28 = vsub.f32 %v1482_v9, %v1525_v23 }
 0x513   : > { %v1527_v29 = vand.u32 4294901760, %v1526_v28 }
 0x515   : > { %v1528_v34 = vsub.f32 %v1526_v28, %v1527_v29 }
 0x516   : > { %2530 = vset.pattern.permute.xlu1 %v2554_v36 }
 0x517   : > { %v1529_v41 = vand.u32 4294901760, %v1528_v34 }
 0x51b   : > { %v1445_v3 = vpop.permute.xlu1 %1444 }
 0x51c   : > { %v2905_v7 = vsub.f32 %v2791_v58, %v1445_v3 }
 0x51e   : > { %1468 = vperm.xlu2 %2527, %v2905_v7   ;;  %1736 = vperm.xlu1 %2530, %v2905_v7   ;;  %v1480_v33 = vsel %vm169_vm0, %v2905_v7, 0 }
 0x51f   : > { %v1517_v51 = vand.u32 4294901760, %v1480_v33 }
 0x521   : > { %1564 = vmatmul.f32.gmra.mxu1 %v1517_v51  ;;  %v1518_v22 = vsub.f32 %v1480_v33, %v1517_v51 }
 0x523   : > { %1602 = vmatmul.f32.gmra.mxu2 %v1518_v22  ;;  %v1519_v25 = vand.u32 4294901760, %v1518_v22 }
 0x525   : > { %1643 = vmatmul.f32.gmra.mxu3 %v1519_v25  ;;  %v1520_v58 = vsub.f32 %v1518_v22, %v1519_v25 }
 0x526   : > { %2528 = vset.pattern.permute.xlu2 %v2554_v36  ;;  %2531 = vset.pattern.permute.xlu1 %v2555_v37 }
 0x527   : > { %1728 = vperm.xlu2 %2528, %v2877_v53   ;;  %1761 = vperm.xlu1 %2531, %v2877_v53   ;;  %v1521_v31 = vand.u32 4294901760, %v1520_v58 }
 0x529   : > { %1522 = vmatmul.f32.gmra.mxu0 %v1521_v31  ;;  %1568 = vmatmul.f32.gmra.mxu1 %v1525_v23 }
 0x52b   : > { %1607 = vmatmul.f32.gmra.mxu2 %v1526_v28 }
 0x52d   : > { %1649 = vmatmul.f32.gmra.mxu3 %v1527_v29 }
 0x52f   : > { %1740 = vperm.xlu2 %2528, %v2900_v20   ;;  %2533 = vset.pattern.permute.xlu1 %v2553_v10 }
 0x531   : > { %1530 = vmatmul.f32.gmra.mxu0 %v1529_v41  ;;  %1707 = vmatmul.f32.vlgmr.msrb.gmra.mxu1 %v2882_v15 }
 0x537   : > { %2532 = vset.pattern.permute.xlu2 %v2553_v10 }
 0x539   : > { %1673 = vmatmul.f32.vlgmr.msrb.gmra.mxu0 %v2882_v15  ;;  %1711 = vmatmul.f32.gmra.mxu1 %v1509_v11 }
 0x541   : > { %1677 = vmatmul.f32.gmra.mxu0 %v1509_v11  ;;  %1715 = vmatmul.f32.gmra.mxu1 %v1517_v51 }
 0x549   : > { %1681 = vmatmul.f32.gmra.mxu0 %v1517_v51  ;;  %1719 = vmatmul.f32.gmra.mxu1 %v1525_v23 }
 0x551   : > { %1685 = vmatmul.f32.gmra.mxu0 %v1525_v23 }
 0x568   : > { %v1459_v42 = vpop.permute.xlu0 %1458 }
 0x570   : > { %v1464_v39 = vpop.permute.xlu1 %1463 }
 0x571   : > { %v1733_v31 = vpop.permute.xlu0 %1732 }
 0x576   : > { %v1557_v44 = vpop.f32.mrf.mxu1 }
 0x578   : > { %v1469_v52 = vpop.permute.xlu2 %1468 }
 0x57e   : > { %v1507_v45 = vpop.f32.mrf.mxu0  ;;  %v1561_v47 = vpop.f32.mrf.mxu1 }
 0x57f   : > { %v1593_v27 = vpop.f32.mrf.mxu2  ;;  %v1508_v49 = vadd.f32 %v1507_v45, %v1459_v42 }
 0x580   : > { %v1632_v26 = vpop.f32.mrf.mxu3  ;;  %v1474_v17 = vpop.permute.xlu1 %1473 }
 0x581   : > { %v1558_v24 = vadd.f32 %v1557_v44, %v1508_v49  ;;  %v1729_v25 = vpop.permute.xlu2 %1728 }
 0x583   : > { %v1594_v54 = vadd.f32 %v1593_v27, %v1558_v24 }
 0x585   : > { %v1633_v18 = vadd.f32 %v1632_v26, %v1594_v54 }
 0x586   : > { %v1515_v21 = vpop.f32.mrf.mxu0 }
 0x587   : > { %v1516_v48 = vadd.f32 %v1515_v21, %v1464_v39  ;;  %v1598_v2 = vpop.f32.mrf.mxu2 }
 0x588   : > { %v1638_v1 = vpop.f32.mrf.mxu3 }
 0x589   : > { %v1562_v38 = vadd.f32 %v1561_v47, %v1516_v48 }
 0x58b   : > { %v1599_v57 = vadd.f32 %v1598_v2, %v1562_v38 }
 0x58d   : > { %v1639_v15 = vadd.f32 %v1638_v1, %v1599_v57 }
 0x590   : > { %v1737_v44 = vpop.permute.xlu1 %1736 }
 0x59e   : > { %v1565_v35 = vpop.f32.mrf.mxu1 }
 0x5a6   : > { %v1523_v32 = vpop.f32.mrf.mxu0  ;;  %v1569_v40 = vpop.f32.mrf.mxu1 }
 0x5a7   : > { %v1524_v55 = vadd.f32 %v1523_v32, %v1469_v52  ;;  %v1603_v63 = vpop.f32.mrf.mxu2 }
 0x5a8   : > { %v1644_v62 = vpop.f32.mrf.mxu3 }
 0x5a9   : > { %v1566_v0 = vadd.f32 %v1565_v35, %v1524_v55 }
 0x5ab   : > { %v1604_v5 = vadd.f32 %v1603_v63, %v1566_v0  ;;  %v2544_v0 = vld [vmem:[%s2633_s22 + $0x4] sm:$0x1] }
 0x5ad   : > { %v1645_v43 = vadd.f32 %v1644_v62, %v1604_v5 }
 0x5ae   : > { %v1531_v12 = vpop.f32.mrf.mxu0  ;;  %v1708_v10 = vpop.f32.mrf.mxu1 }
 0x5af   : > { %v1532_v30 = vadd.f32 %v1531_v12, %v1474_v17  ;;  %v1608_v33 = vpop.f32.mrf.mxu2 }
 0x5b0   : > { %v1650_v29 = vpop.f32.mrf.mxu3 }
 0x5b1   : > { %v1570_v13 = vadd.f32 %v1569_v40, %v1532_v30 }
 0x5b3   : > { %v1609_v51 = vadd.f32 %v1608_v33, %v1570_v13 }
 0x5b5   : > { %v1651_v34 = vadd.f32 %v1650_v29, %v1609_v51 }
 0x5b6   : > { %v1674_v50 = vpop.f32.mrf.mxu0  ;;  %v1712_v59 = vpop.f32.mrf.mxu1 }
 0x5b7   : > { %v1675_v11 = vadd.f32 %v1674_v50, %v1633_v18 }
 0x5b9   : > { %v1709_v3 = vadd.f32 %v1708_v10, %v1675_v11  ;;  %v1741_v10 = vpop.permute.xlu2 %1740 }
 0x5bb   : > { %v1723_v28 = vmax.f32 %v1709_v3, 0.0  ;;  %vm1767_vm15 = vcmp.gt.f32.partialorder %v1709_v3, 0.0 }
 0x5bd   : > { %v1743_v47 = vmul.f32 %v1729_v25, %v1723_v28 }
 0x5be   : > { %v1678_v4 = vpop.f32.mrf.mxu0  ;;  %v1716_v16 = vpop.f32.mrf.mxu1 }
 0x5bf   : > { %v1679_v60 = vadd.f32 %v1678_v4, %v1639_v15  ;;  %v1747_v12 = vsel %vm445_vm2, %v1743_v47, 0.0 }
 0x5c1   : > { %v1713_v14 = vadd.f32 %v1712_v59, %v1679_v60  ;;  %v1762_v59 = vpop.permute.xlu1 %1761 }
 0x5c3   : > { %v1724_v23 = vmax.f32 %v1713_v14, 0.0  ;;  %vm1768_vm4 = vcmp.gt.f32.partialorder %v1713_v14, 0.0 }
 0x5c5   : > { %v1744_v41 = vmul.f32 %v1733_v31, %v1724_v23 }
 0x5c6   : > { %v1682_v19 = vpop.f32.mrf.mxu0  ;;  %v1720_v32 = vpop.f32.mrf.mxu1 }
 0x5c7   : > { %v1683_v9 = vadd.f32 %v1682_v19, %v1645_v43  ;;  %v1748_v40 = vsel %vm445_vm2, %v1744_v41, 0.0 }
 0x5c8   : > { %v1749_v48 = vadd.f32 %v1748_v40, %v1747_v12 }
 0x5c9   : > { %v2922_v22 = vadd.f32 %v1716_v16, %v1683_v9 }
 0x5cb   : > { %v1725_v58 = vmax.f32 %v2922_v22, 0.0 }
 0x5cd   : > { %v1745_v21 = vmul.f32 %v1737_v44, %v1725_v58 }
 0x5ce   : > { %v1686_v45 = vpop.f32.mrf.mxu0 }
 0x5cf   : > { %v1687_v35 = vadd.f32 %v1686_v45, %v1651_v34  ;;  %v1750_v26 = vsel %vm445_vm2, %v1745_v21, 0.0 }
 0x5d0   : > { %v1751_v49 = vadd.f32 %v1750_v26, %v1749_v48 }
 0x5d1   : > { %v2926_v27 = vadd.f32 %v1720_v32, %v1687_v35 }
 0x5d3   : > { %v1726_v39 = vmax.f32 %v2926_v27, 0.0  ;;  %vm1770_vm5 = vcmp.gt.f32.partialorder %v2926_v27, 0.0 }
 0x5d5   : > { %v1746_v42 = vmul.f32 %v1741_v10, %v1726_v39 }
 0x5d7   : > { %v1752_v2 = vsel %vm445_vm2, %v1746_v42, 0.0 }
 0x5d8   : > { %v1753_v50 = vadd.f32 %v1752_v2, %v1751_v49 }
 0x5da   : > { %v1754_v38 = vrot.slane %v1753_v50, 4 }
 0x5dc   : > { %v1755_v52 = vadd.f32 %v1754_v38, %v1753_v50 }
 0x5de   : > { %v1756_v24 = vrot.slane %v1755_v52, 2 }
 0x5e0   : > { %v1757_v55 = vadd.f32 %v1756_v24, %v1755_v52 }
 0x5e2   : > { %v1758_v1 = vrot.slane %v1757_v55, 1 }
 0x5e4   : > { %v1759_v57 = vadd.f32 %v1758_v1, %v1757_v55 }
 0x5e6   : > { %v1764_v54 = vadd.f32 %v1762_v59, %v1759_v57 }
 0x5e8   : > { %v1765_v63 = vsub.f32 %v1764_v54, %v2544_v0 }
 0x5ea   : > { %v1766_v4 = vmul.f32 0.03125, %v1765_v63 }
 0x5ec   : > { %v2047_v15 = vsel %vm749_vm3, %v1766_v4, 0.0  ;;  %v1771_v17 = vperm.slane %v1766_v4, 0  ;;  %vm1769_vm3 = vcmp.gt.f32.partialorder %v2922_v22, 0.0 }
 0x5ed   : > { %2048 = vadd.xlane.f32.xlu2 %v2047_v15 }
 0x5ee   : > { %v2032_v18 = vmul.f32 %v1771_v17, %v1724_v23  ;;  %v2031_v5 = vmul.f32 %v1771_v17, %v1723_v28  ;;  %v1772_v30 = vmul.f32 %v1771_v17, %v1729_v25  ;;  %v2033_v60 = vmul.f32 %v1771_v17, %v1725_v58 }
 0x5ef   : > { %v1773_v62 = vmul.f32 %v1771_v17, %v1733_v31  ;;  %v1774_v16 = vmul.f32 %v1771_v17, %v1737_v44  ;;  %v2034_v25 = vmul.f32 %v1771_v17, %v1726_v39  ;;  %v1775_v44 = vmul.f32 %v1771_v17, %v1741_v10 }
 0x5f0   : > { %v2038_v11 = vsel %vm445_vm2, %v2032_v18, 0.0  ;;  %v2035_v43 = vsel %vm445_vm2, %v2031_v5, 0.0  ;;  %v1776_v13 = vsel %vm1767_vm15, %v1772_v30, 0.0  ;;  %v2041_v14 = vsel %vm445_vm2, %v2033_v60, 0.0 }
 0x5f1   : > { %2039 = vadd.xlane.f32.xlu1 %v2038_v11  ;;  %2036 = vadd.xlane.f32.xlu0 %v2035_v43  ;;  %v1781_v19 = vsel %vm445_vm2, %v1776_v13, 0  ;;  %v1777_v9 = vsel %vm1768_vm4, %v1773_v62, 0.0  ;;  %v1778_v28 = vsel %vm1769_vm3, %v1774_v16, 0.0  ;;  %v2044_v34 = vsel %vm445_vm2, %v2034_v25, 0.0 }
 0x5f2   : > { %v1809_v33 = vand.u32 4294901760, %v1781_v19  ;;  %v1784_v51 = vsel %vm445_vm2, %v1777_v9, 0  ;;  %v1787_v29 = vsel %vm445_vm2, %v1778_v28, 0  ;;  %v1779_v21 = vsel %vm1770_vm5, %v1775_v44, 0.0 }
 0x5f3   : > { %v1817_v3 = vand.u32 4294901760, %v1784_v51  ;;  %v1825_v47 = vand.u32 4294901760, %v1787_v29  ;;  %v1790_v40 = vsel %vm445_vm2, %v1779_v21, 0  ;;  %vm2416_vm2 = vcmask 64512  }
 0x5f4   : > { %1864 = vmatmul.f32.vlgmr.msra.gmra.mxu3 %v1809_v33  ;;  %v1810_v23 = vsub.f32 %v1781_v19, %v1809_v33  ;;  %v1833_v39 = vand.u32 4294901760, %v1790_v40 }
 0x5f5   : > { %2042 = vadd.xlane.f32.xlu2 %v2041_v14  ;;  %v1818_v31 = vsub.f32 %v1784_v51, %v1817_v3  ;;  %v1826_v32 = vsub.f32 %v1787_v29, %v1825_v47 }
 0x5f6   : > { %1900 = vmatmul.f32.vlgmr.msra.gmra.mxu0 %v1810_v23  ;;  %v1811_v58 = vand.u32 4294901760, %v1810_v23  ;;  %v1834_v48 = vsub.f32 %v1790_v40, %v1833_v39 }
 0x5f7   : > { %v1819_v45 = vand.u32 4294901760, %v1818_v31  ;;  %v1827_v26 = vand.u32 4294901760, %v1826_v32 }
 0x5f8   : > { %1939 = vmatmul.f32.vlgmr.msra.gmra.mxu1 %v1811_v58  ;;  %v1812_v41 = vsub.f32 %v1810_v23, %v1811_v58  ;;  %v1835_v27 = vand.u32 4294901760, %v1834_v48 }
 0x5f9   : > { %2045 = vadd.xlane.f32.xlu0 %v2044_v34  ;;  %v1820_v35 = vsub.f32 %v1818_v31, %v1819_v45  ;;  %v1828_v10 = vsub.f32 %v1826_v32, %v1827_v26 }
 0x5fa   : > { %v1813_v22 = vand.u32 4294901760, %v1812_v41  ;;  %v1836_v49 = vsub.f32 %v1834_v48, %v1835_v27 }
 0x5fb   : > { %v1821_v12 = vand.u32 4294901760, %v1820_v35  ;;  %v1829_v42 = vand.u32 4294901760, %v1828_v10 }
 0x5fc   : > { %1814 = vmatmul.f32.vlgmr.msra.gmra.mxu2 %v1813_v22  ;;  %1868 = vmatmul.f32.gmra.mxu3 %v1817_v3  ;;  %v1837_v2 = vand.u32 4294901760, %v1836_v49 }
 0x5fe   : > { %1905 = vmatmul.f32.gmra.mxu0 %v1818_v31 }
 0x600   : > { %1945 = vmatmul.f32.gmra.mxu1 %v1819_v45 }
 0x604   : > { %1822 = vmatmul.f32.gmra.mxu2 %v1821_v12  ;;  %1872 = vmatmul.f32.gmra.mxu3 %v1825_v47 }
 0x606   : > { %1910 = vmatmul.f32.gmra.mxu0 %v1826_v32 }
 0x608   : > { %1951 = vmatmul.f32.gmra.mxu1 %v1827_v26 }
 0x60c   : > { %1830 = vmatmul.f32.gmra.mxu2 %v1829_v42  ;;  %1876 = vmatmul.f32.gmra.mxu3 %v1833_v39 }
 0x60e   : > { %1915 = vmatmul.f32.gmra.mxu0 %v1834_v48 }
 0x610   : > { %1957 = vmatmul.f32.gmra.mxu1 %v1835_v27 }
 0x614   : > { %1838 = vmatmul.f32.gmra.mxu2 %v1837_v2  ;;  %2015 = vmatmul.f32.vlgmr.msrb.gmra.mxu3 %v1809_v33 }
 0x61c   : > { %1981 = vmatmul.f32.vlgmr.msrb.gmra.mxu2 %v1809_v33  ;;  %2019 = vmatmul.f32.gmra.mxu3 %v1817_v3 }
 0x624   : > { %1985 = vmatmul.f32.gmra.mxu2 %v1817_v3  ;;  %2023 = vmatmul.f32.gmra.mxu3 %v1825_v47 }
 0x62c   : > { %1989 = vmatmul.f32.gmra.mxu2 %v1825_v47  ;;  %2027 = vmatmul.f32.gmra.mxu3 %v1833_v39 }
 0x634   : > { %1993 = vmatmul.f32.gmra.mxu2 %v1833_v39 }
 0x660   : > { %v2049_v60 = vpop.xlane.xlu2 %2048 }
 0x661   : > { %v2050_v16 = vperm.slane %v2049_v60, 0 }
 0x664   : > { %v2037_v19 = vpop.xlane.xlu0 %2036  ;;  %v2040_v34 = vpop.xlane.xlu1 %2039 }
 0x668   : > { %v2043_v10 = vpop.xlane.xlu2 %2042 }
 0x673   : > { %v1901_v59 = vpop.f32.mrf.mxu0 }
 0x675   : > { %v1940_v0 = vpop.f32.mrf.mxu1 }
 0x677   : > { %v1865_v50 = vpop.f32.mrf.mxu3 }
 0x67b   : > { %v1906_v17 = vpop.f32.mrf.mxu0 }
 0x67d   : > { %v1946_v11 = vpop.f32.mrf.mxu1 }
 0x67f   : > { %v1815_v38 = vpop.f32.mrf.mxu2  ;;  %v1869_v52 = vpop.f32.mrf.mxu3 }
 0x680   : > { %v1866_v54 = vadd.f32 %v1865_v50, %v1815_v38 }
 0x682   : > { %v1902_v4 = vadd.f32 %v1901_v59, %v1866_v54 }
 0x683   : > { %v1911_v25 = vpop.f32.mrf.mxu0 }
 0x684   : > { %v1941_v5 = vadd.f32 %v1940_v0, %v1902_v4 }
 0x685   : > { %v1952_v41 = vpop.f32.mrf.mxu1 }
 0x687   : > { %v1823_v24 = vpop.f32.mrf.mxu2  ;;  %v1873_v55 = vpop.f32.mrf.mxu3 }
 0x688   : > { %v1870_v18 = vadd.f32 %v1869_v52, %v1823_v24 }
 0x68a   : > { %v1907_v43 = vadd.f32 %v1906_v17, %v1870_v18 }
 0x68b   : > { %v1916_v12 = vpop.f32.mrf.mxu0 }
 0x68c   : > { %v1947_v14 = vadd.f32 %v1946_v11, %v1907_v43 }
 0x68d   : > { %v1958_v42 = vpop.f32.mrf.mxu1 }
 0x68f   : > { %v1831_v1 = vpop.f32.mrf.mxu2  ;;  %v1877_v57 = vpop.f32.mrf.mxu3 }
 0x690   : > { %v1874_v3 = vadd.f32 %v1873_v55, %v1831_v1  ;;  %v2046_v55 = vpop.xlane.xlu0 %2045 }
 0x692   : > { %v1912_v31 = vadd.f32 %v1911_v25, %v1874_v3 }
 0x694   : > { %v1953_v47 = vadd.f32 %v1952_v41, %v1912_v31 }
 0x697   : > { %v1839_v63 = vpop.f32.mrf.mxu2  ;;  %v2016_v15 = vpop.f32.mrf.mxu3 }
 0x698   : > { %v1878_v45 = vadd.f32 %v1877_v57, %v1839_v63 }
 0x69a   : > { %v1917_v26 = vadd.f32 %v1916_v12, %v1878_v45 }
 0x69c   : > { %v1959_v49 = vadd.f32 %v1958_v42, %v1917_v26 }
 0x69f   : > { %v1982_v30 = vpop.f32.mrf.mxu2  ;;  %v2020_v33 = vpop.f32.mrf.mxu3 }
 0x6a0   : > { %v1983_v62 = vadd.f32 %v1982_v30, %v1941_v5  ;;  %v144_v30 = vld [vmem:[%s2633_s22 + $0x5] sm:$0x7] }
 0x6a1   : > { %v2132_v60 = vsel %vm178_vm1, %v144_v30, 0 }
 0x6a2   : > { %v2017_v13 = vadd.f32 %v2016_v15, %v1983_v62  ;;  %v2149_v62 = vand.u32 4294901760, %v2132_v60 }
 0x6a4   : > { %v2051_v9 = vsel %vm754_vm8, %v2017_v13, %v2037_v19  ;;  %2150 = vmatpush.msrb.mxu0 %v2149_v62  ;;  %2277 = vmatpush.msra.mxu3 %v2149_v62 }
 0x6a5   : > { %v2055_v51 = vsel %vm759_vm9, %v2051_v9, %v2050_v16 }
 0x6a6   : > { %v2059_v23 = vsel %vm764_vm10, %v2055_v51, 0.0 }
 0x6a7   : > { %v1986_v28 = vpop.f32.mrf.mxu2  ;;  %2067 = vrot.lane.b32.xlu1 %v2059_v23, %s2560_s7  ;;  %v2024_v35 = vpop.f32.mrf.mxu3 }
 0x6a8   : > { %v1987_v58 = vadd.f32 %v1986_v28, %v1947_v14 }
 0x6aa   : > { %v2021_v29 = vadd.f32 %v2020_v33, %v1987_v58 }
 0x6ac   : > { %v2052_v44 = vsel %vm754_vm8, %v2021_v29, %v2040_v34 }
 0x6ad   : > { %v2056_v22 = vsel %vm759_vm9, %v2052_v44, %v2050_v16 }
 0x6ae   : > { %v2060_v21 = vsel %vm764_vm10, %v2056_v22, 0.0 }
 0x6af   : > { %v1990_v32 = vpop.f32.mrf.mxu2  ;;  %2069 = vrot.lane.b32.xlu2 %v2060_v21, %s2560_s7  ;;  %v2028_v52 = vpop.f32.mrf.mxu3 }
 0x6b0   : > { %v1991_v40 = vadd.f32 %v1990_v32, %v1953_v47 }
 0x6b2   : > { %v2025_v39 = vadd.f32 %v2024_v35, %v1991_v40 }
 0x6b4   : > { %v2053_v48 = vsel %vm754_vm8, %v2025_v39, %v2043_v10 }
 0x6b5   : > { %v2057_v27 = vsel %vm759_vm9, %v2053_v48, %v2050_v16 }
 0x6b6   : > { %v2061_v2 = vsel %vm764_vm10, %v2057_v27, 0.0 }
 0x6b7   : > { %v1994_v50 = vpop.f32.mrf.mxu2  ;;  %2071 = vrot.lane.b32.xlu0 %v2061_v2, %s2560_s7 }
 0x6b8   : > { %v1995_v38 = vadd.f32 %v1994_v50, %v1959_v49 }
 0x6ba   : > { %v2029_v24 = vadd.f32 %v2028_v52, %v1995_v38 }
 0x6bc   : > { %v2054_v1 = vsel %vm754_vm8, %v2029_v24, %v2046_v55 }
 0x6bd   : > { %v2058_v57 = vsel %vm759_vm9, %v2054_v1, %v2050_v16 }
 0x6be   : > { %v2062_v59 = vsel %vm764_vm10, %v2058_v57, 0.0 }
 0x6bf   : > { %2073 = vrot.lane.b32.xlu1 %v2062_v59, %s2560_s7 }
 0x709   : > { %v2070_v54 = vpop.permute.xlu2 %2069 }
 0x70a   : > { %v2080_v0 = vmul.f32 %v2855_v46, %v2070_v54  ;;  %v2200_v46 = vsub.f32 %v2132_v60, %v2149_v62 }
 0x70c   : > { %2089 = vrot.lane.b32.xlu2 %v2080_v0, %s2561_s8  ;;  %v2201_v11 = vand.u32 4294901760, %v2200_v46  ;;  %2239 = vmatpush.msra.mxu2 %v2200_v46 }
 0x70e   : > { %2321 = vmatpush.msra.mxu0 %v2201_v11 }
 0x719   : > { %v2068_v63 = vpop.permute.xlu1 %2067 }
 0x71a   : > { %v2079_v4 = vmul.f32 %v2861_v56, %v2068_v63  ;;  %v2202_v56 = vsub.f32 %v2200_v46, %v2201_v11 }
 0x71c   : > { %2087 = vrot.lane.b32.xlu0 %v2079_v4, %s2561_s8  ;;  %v2203_v43 = vand.u32 4294901760, %v2202_v56 }
 0x71e   : > { %2204 = vmatpush.msrb.mxu1 %v2203_v43 }
 0x720   : > { %2355 = vmatpush.msra.mxu1 %v2149_v62 }
 0x729   : > { %v2072_v15 = vpop.permute.xlu0 %2071 }
 0x72a   : > { %v2081_v17 = vmul.f32 %v2867_v6, %v2072_v15 }
 0x72c   : > { %2091 = vrot.lane.b32.xlu1 %v2081_v17, %s2561_s8 }
 0x731   : > { %v2074_v18 = vpop.permute.xlu1 %2073 }
 0x732   : > { %v2082_v5 = vmul.f32 %v2873_v61, %v2074_v18 }
 0x734   : > { %2093 = vrot.lane.b32.xlu0 %v2082_v5, %s2561_s8 }
 0x766   : > { %v2090_v6 = vpop.permute.xlu2 %2089 }
 0x767   : > { %v2100_v61 = vsub.f32 %v2888_v8, %v2090_v6 }
 0x769   : > { %v2418_v13 = vsel %vm2416_vm2, %v2100_v61, 0.0  ;;  %2110 = vperm.xlu1 %2533, %v2100_v61   ;;  %v2125_v9 = vsel %vm169_vm0, %v2100_v61, 0 }
 0x76a   : > { %2423 = vst [vmem:[%s2970_s14 + $0x8] sm:$0xff] %v2418_v13  ;;  %v2159_v8 = vand.u32 4294901760, %v2125_v9 }
 0x76c   : > { %v2160_v25 = vsub.f32 %v2125_v9, %v2159_v8 }
 0x76e   : > { %v2161_v58 = vand.u32 4294901760, %v2160_v25 }
 0x770   : > { %v2162_v29 = vsub.f32 %v2160_v25, %v2161_v58 }
 0x771   : > { %2535 = vset.pattern.permute.xlu1 %v2554_v36 }
 0x772   : > { %v2163_v22 = vand.u32 4294901760, %v2162_v29 }
 0x78e   : > { %v2088_v16 = vpop.permute.xlu0 %2087 }
 0x78f   : > { %v2099_v19 = vsub.f32 %v2877_v53, %v2088_v16 }
 0x791   : > { %v2417_v33 = vsel %vm2416_vm2, %v2099_v19, 0.0  ;;  %2105 = vperm.xlu2 %2532, %v2099_v19   ;;  %2378 = vperm.xlu1 %2535, %v2099_v19   ;;  %v2123_v51 = vsel %vm169_vm0, %v2099_v19, 0 }
 0x792   : > { %2422 = vst [vmem:[%s2970_s14] sm:$0xff] %v2417_v33  ;;  %v2151_v3 = vand.u32 4294901760, %v2123_v51 }
 0x794   : > { %2206 = vmatmul.f32.vlgmr.msrb.gmra.mxu1 %v2151_v3  ;;  %v2152_v14 = vsub.f32 %v2123_v51, %v2151_v3 }
 0x796   : > { %2242 = vmatmul.f32.vlgmr.msra.gmra.mxu2 %v2152_v14  ;;  %v2153_v23 = vand.u32 4294901760, %v2152_v14 }
 0x798   : > { %2281 = vmatmul.f32.vlgmr.msra.gmra.mxu3 %v2153_v23  ;;  %v2154_v28 = vsub.f32 %v2152_v14, %v2153_v23 }
 0x79a   : > { %v2155_v53 = vand.u32 4294901760, %v2154_v28 }
 0x79c   : > { %2156 = vmatmul.f32.vlgmr.msrb.gmra.mxu0 %v2155_v53  ;;  %2210 = vmatmul.f32.gmra.mxu1 %v2159_v8 }
 0x79e   : > { %2247 = vmatmul.f32.gmra.mxu2 %v2160_v25  ;;  %v2092_v31 = vpop.permute.xlu1 %2091 }
 0x79f   : > { %v2101_v34 = vsub.f32 %v2905_v7, %v2092_v31 }
 0x7a0   : > { %2287 = vmatmul.f32.gmra.mxu3 %v2161_v58 }
 0x7a1   : > { %v2419_v41 = vsel %vm2416_vm2, %v2101_v34, 0.0  ;;  %2386 = vperm.xlu1 %2535, %v2101_v34   ;;  %2115 = vperm.xlu0 %2534, %v2101_v34   ;;  %v2127_v44 = vsel %vm169_vm0, %v2101_v34, 0 }
 0x7a2   : > { %2424 = vst [vmem:[%s2970_s14 + $0x10] sm:$0xff] %v2419_v41  ;;  %v2167_v45 = vand.u32 4294901760, %v2127_v44 }
 0x7a4   : > { %2164 = vmatmul.f32.gmra.mxu0 %v2163_v22  ;;  %2214 = vmatmul.f32.gmra.mxu1 %v2167_v45  ;;  %v2168_v47 = vsub.f32 %v2127_v44, %v2167_v45 }
 0x7a6   : > { %v2094_v21 = vpop.permute.xlu0 %2093  ;;  %2252 = vmatmul.f32.gmra.mxu2 %v2168_v47  ;;  %v2169_v35 = vand.u32 4294901760, %v2168_v47 }
 0x7a7   : > { %v2102_v32 = vsub.f32 %v2900_v20, %v2094_v21 }
 0x7a8   : > { %2293 = vmatmul.f32.gmra.mxu3 %v2169_v35  ;;  %v2170_v7 = vsub.f32 %v2168_v47, %v2169_v35 }
 0x7a9   : > { %v2420_v40 = vsel %vm2416_vm2, %v2102_v32, 0.0  ;;  %2120 = vperm.xlu2 %2532, %v2102_v32   ;;  %2537 = vset.pattern.permute.xlu0 %v2554_v36  ;;  %v2129_v12 = vsel %vm169_vm0, %v2102_v32, 0  ;;  %vm2397_vm0 = vcmask 261120  }
 0x7aa   : > { %2425 = vst [vmem:[%s2970_s14 + $0x18] sm:$0xff] %v2420_v40  ;;  %2390 = vperm.xlu0 %2537, %v2102_v32   ;;  %v2171_v26 = vand.u32 4294901760, %v2170_v7  ;;  %v2175_v39 = vand.u32 4294901760, %v2129_v12 }
 0x7ac   : > { %2172 = vmatmul.f32.gmra.mxu0 %v2171_v26  ;;  %2218 = vmatmul.f32.gmra.mxu1 %v2175_v39  ;;  %v2176_v10 = vsub.f32 %v2129_v12, %v2175_v39 }
 0x7ae   : > { %2257 = vmatmul.f32.gmra.mxu2 %v2176_v10  ;;  %v2177_v48 = vand.u32 4294901760, %v2176_v10 }
 0x7b0   : > { %2299 = vmatmul.f32.gmra.mxu3 %v2177_v48  ;;  %v2178_v20 = vsub.f32 %v2176_v10, %v2177_v48 }
 0x7b1   : > { %2536 = vset.pattern.permute.xlu2 %v2554_v36 }
 0x7b2   : > { %2382 = vperm.xlu2 %2536, %v2100_v61   ;;  %v2179_v42 = vand.u32 4294901760, %v2178_v20  ;;  %2539 = vset.pattern.permute.xlu0 %v2555_v37 }
 0x7b4   : > { %2180 = vmatmul.f32.gmra.mxu0 %v2179_v42  ;;  %2357 = vmatmul.f32.vlgmr.msra.gmra.mxu1 %v2151_v3 }
 0x7ba   : > { %2538 = vset.pattern.permute.xlu2 %v2555_v37 }
 0x7bb   : > { %2412 = vperm.xlu2 %2538, %v2099_v19  }
 0x7bc   : > { %2323 = vmatmul.f32.vlgmr.msra.gmra.mxu0 %v2151_v3  ;;  %2361 = vmatmul.f32.gmra.mxu1 %v2159_v8 }
 0x7c4   : > { %2327 = vmatmul.f32.gmra.mxu0 %v2159_v8  ;;  %2365 = vmatmul.f32.gmra.mxu1 %v2167_v45 }
 0x7cc   : > { %2331 = vmatmul.f32.gmra.mxu0 %v2167_v45  ;;  %2369 = vmatmul.f32.gmra.mxu1 %v2175_v39 }
 0x7d4   : > { %2335 = vmatmul.f32.gmra.mxu0 %v2175_v39 }
 0x7db   : > { %v2111_v57 = vpop.permute.xlu1 %2110 }
 0x7eb   : > { %v2106_v54 = vpop.permute.xlu2 %2105 }
 0x803   : > { %v2121_v61 = vpop.permute.xlu2 %2120  ;;  %v2379_v3 = vpop.permute.xlu1 %2378 }
 0x80c   : > { %v2383_v45 = vpop.permute.xlu2 %2382 }
 0x811   : > { %v2207_v27 = vpop.f32.mrf.mxu1 }
 0x813   : > { %v2116_v17 = vpop.permute.xlu0 %2115  ;;  %v2387_v32 = vpop.permute.xlu1 %2386 }
 0x819   : > { %v2157_v49 = vpop.f32.mrf.mxu0  ;;  %v2211_v2 = vpop.f32.mrf.mxu1 }
 0x81a   : > { %v2243_v24 = vpop.f32.mrf.mxu2  ;;  %v2158_v63 = vadd.f32 %v2157_v49, %v2106_v54  ;;  %v2413_v54 = vpop.permute.xlu2 %2412 }
 0x81b   : > { %v2282_v55 = vpop.f32.mrf.mxu3 }
 0x81c   : > { %v2208_v5 = vadd.f32 %v2207_v27, %v2158_v63  ;;  %v2391_v49 = vpop.permute.xlu0 %2390 }
 0x81e   : > { %v2244_v46 = vadd.f32 %v2243_v24, %v2208_v5 }
 0x820   : > { %v2283_v13 = vadd.f32 %v2282_v55, %v2244_v46 }
 0x821   : > { %v2165_v36 = vpop.f32.mrf.mxu0  ;;  %v2215_v50 = vpop.f32.mrf.mxu1 }
 0x822   : > { %v2166_v59 = vadd.f32 %v2165_v36, %v2111_v57  ;;  %v2248_v0 = vpop.f32.mrf.mxu2 }
 0x823   : > { %v2288_v18 = vpop.f32.mrf.mxu3 }
 0x824   : > { %v2212_v15 = vadd.f32 %v2211_v2, %v2166_v59 }
 0x826   : > { %v2249_v60 = vadd.f32 %v2248_v0, %v2212_v15 }
 0x828   : > { %v2289_v6 = vadd.f32 %v2288_v18, %v2249_v60 }
 0x829   : > { %v2173_v38 = vpop.f32.mrf.mxu0  ;;  %v2219_v52 = vpop.f32.mrf.mxu1 }
 0x82a   : > { %v2174_v30 = vadd.f32 %v2173_v38, %v2116_v17  ;;  %v2253_v56 = vpop.f32.mrf.mxu2 }
 0x82b   : > { %v2294_v33 = vpop.f32.mrf.mxu3 }
 0x82c   : > { %v2216_v11 = vadd.f32 %v2215_v50, %v2174_v30 }
 0x82e   : > { %v2254_v16 = vadd.f32 %v2253_v56, %v2216_v11 }
 0x830   : > { %v2295_v8 = vadd.f32 %v2294_v33, %v2254_v16 }
 0x831   : > { %v2181_v1 = vpop.f32.mrf.mxu0  ;;  %v2358_v37 = vpop.f32.mrf.mxu1 }
 0x832   : > { %v2182_v19 = vadd.f32 %v2181_v1, %v2121_v61  ;;  %v2258_v31 = vpop.f32.mrf.mxu2 }
 0x833   : > { %v2300_v47 = vpop.f32.mrf.mxu3 }
 0x834   : > { %v2220_v14 = vadd.f32 %v2219_v52, %v2182_v19 }
 0x836   : > { %v2259_v29 = vadd.f32 %v2258_v31, %v2220_v14 }
 0x838   : > { %v2301_v21 = vadd.f32 %v2300_v47, %v2259_v29 }
 0x839   : > { %v2324_v4 = vpop.f32.mrf.mxu0  ;;  %v2362_v62 = vpop.f32.mrf.mxu1 }
 0x83a   : > { %v2325_v51 = vadd.f32 %v2324_v4, %v2283_v13 }
 0x83c   : > { %v2359_v53 = vadd.f32 %v2358_v37, %v2325_v51 }
 0x83e   : > { %v2373_v44 = vmax.f32 %v2359_v53, 0.0 }
 0x840   : > { %v2393_v40 = vmul.f32 %v2379_v3, %v2373_v44 }
 0x841   : > { %v2328_v43 = vpop.f32.mrf.mxu0  ;;  %v2366_v25 = vpop.f32.mrf.mxu1 }
 0x842   : > { %v2329_v9 = vadd.f32 %v2328_v43, %v2289_v6  ;;  %v2398_v20 = vsel %vm2397_vm0, %v2393_v40, 0.0 }
 0x844   : > { %v2363_v23 = vadd.f32 %v2362_v62, %v2329_v9 }
 0x846   : > { %v2374_v34 = vmax.f32 %v2363_v23, 0.0 }
 0x848   : > { %v2394_v35 = vmul.f32 %v2383_v45, %v2374_v34 }
 0x849   : > { %v2332_v28 = vpop.f32.mrf.mxu0  ;;  %v2370_v39 = vpop.f32.mrf.mxu1 }
 0x84a   : > { %v2333_v58 = vadd.f32 %v2332_v28, %v2295_v8  ;;  %v2399_v10 = vsel %vm2397_vm0, %v2394_v35, 0.0 }
 0x84b   : > { %v2400_v2 = vadd.f32 %v2399_v10, %v2398_v20 }
 0x84c   : > { %v2367_v41 = vadd.f32 %v2366_v25, %v2333_v58 }
 0x84e   : > { %v2375_v22 = vmax.f32 %v2367_v41, 0.0 }
 0x850   : > { %v2395_v12 = vmul.f32 %v2387_v32, %v2375_v22 }
 0x851   : > { %v2336_v7 = vpop.f32.mrf.mxu0 }
 0x852   : > { %v2337_v26 = vadd.f32 %v2336_v7, %v2301_v21  ;;  %v2401_v42 = vsel %vm2397_vm0, %v2395_v12, 0.0 }
 0x853   : > { %v2402_v50 = vadd.f32 %v2401_v42, %v2400_v2 }
 0x854   : > { %v2371_v48 = vadd.f32 %v2370_v39, %v2337_v26 }
 0x856   : > { %v2376_v27 = vmax.f32 %v2371_v48, 0.0 }
 0x858   : > { %v2396_v36 = vmul.f32 %v2391_v49, %v2376_v27 }
 0x85a   : > { %v2403_v38 = vsel %vm2397_vm0, %v2396_v36, 0.0 }
 0x85b   : > { %v2404_v52 = vadd.f32 %v2403_v38, %v2402_v50 }
 0x85d   : > { %v2405_v24 = vrot.slane %v2404_v52, 4 }
 0x85f   : > { %v2406_v55 = vadd.f32 %v2405_v24, %v2404_v52 }
 0x861   : > { %v2407_v1 = vrot.slane %v2406_v55, 2 }
 0x863   : > { %v2408_v57 = vadd.f32 %v2407_v1, %v2406_v55 }
 0x865   : > { %v2409_v37 = vrot.slane %v2408_v57, 1 }
 0x867   : > { %v2410_v59 = vadd.f32 %v2409_v37, %v2408_v57 }
 0x869   : > { %v2415_v0 = vadd.f32 %v2413_v54, %v2410_v59 }
 0x86b   : > { %v2421_v63 = vsel %vm2397_vm0, %v2415_v0, 0.0 }
 0x86c   : > { %v2426_v4 = vperm.slane %v2421_v63, 0 }
 0x86e   : > { %2427 = vst [vmem:[%s2970_s14 + $0x20] sm:$0xff] %v2426_v4 }
 0x86f PF: > { %s12_s9 = sadd.s32 1, %s2551_s9  }
 0x870   : > { %p9_p4 = scmp.ge.s32.totalorder %s12_s9, 4  }
 0x872   :  { %11 = sbr.rel (!%p9_p4) target bundleno = 1 (0x1), region = 58 }

</bundles_post_ra>
